<compile_context>
chip_gen: v7x
topology: tpu7x:2x2x1
jax: 0.10.0
libtpu: 0.0.40
codegen_flags: <defaults>
</compile_context>

<pallas_src>
import functools

import jax
import jax.numpy as jnp
from jax import lax
from jax.experimental import pallas as pl
from jax.experimental.pallas import tpu as pltpu


def _round_up(x, m):
    return (x + m - 1) // m * m


def _embeddings_kernel(
    tok_ids_ref,   # SMEM (n_pad,) int32   -- scalar prefetch (DMA source ids)
    seg_ids_ref,   # VMEM (tile, 1) int32  -- this tile's segment ids
    tok_tab_hbm,   # HBM  (V, D)           -- memory_space=pl.ANY (manual DMA)
    seg_tab_ref,   # VMEM (512, D)         -- resident (same block every step)
    out_ref,       # VMEM (tile, D)
    tok_buf,       # VMEM (2, tile, D)     -- cross-step double buffer
    sem,           # DMA semaphores (2,)   -- one per buffer slot
    *,
    unroll,
):
    tile, d = out_ref.shape
    nseg = seg_tab_ref.shape[0]
    i = pl.program_id(0)
    nsteps = pl.num_programs(0)
    slot = i % 2

    # ---- issue all row-gather DMAs of tile `step` into buffer slot `slot_`.
    def issue(step, slot_):
        base = step * tile

        @pl.loop(0, tile // unroll)
        def _issue_chunk(jj):
            j0 = pl.multiple_of(jj * unroll, unroll)
            for u in range(unroll):           # static unroll by `unroll`
                j = j0 + u
                tid = tok_ids_ref[base + j]
                pltpu.make_async_copy(
                    tok_tab_hbm.at[pl.ds(tid, 1)],
                    tok_buf.at[slot_, pl.ds(j, 1)],
                    sem.at[slot_],
                ).start()

    # Prime the pipeline on the very first step.
    @pl.when(i == 0)
    def _prime():
        issue(0, 0)

    # Prefetch the NEXT tile's token rows into the other slot; these DMAs
    # overlap with the one-hot matmul and the current-slot wait below.
    @pl.when(i + 1 < nsteps)
    def _prefetch_next():
        issue(i + 1, 1 - slot)

    # ---- segment contribution: VMEM-resident table, one-hot MXU gather.
    seg_col = seg_ids_ref[...]                                      # (tile, 1)
    onehot = (
        jnp.broadcast_to(seg_col, (tile, nseg))
        == lax.broadcasted_iota(jnp.int32, (tile, nseg), 1)
    ).astype(seg_tab_ref.dtype)                                     # (tile, 512)
    seg_rows = jnp.dot(
        onehot,
        seg_tab_ref[...],
        preferred_element_type=jnp.float32,
        precision=lax.Precision.HIGHEST,
    )                                                               # (tile, D)

    # ---- single consolidated wait for ALL `tile` row copies of this slot
    # (descriptor bytes = tile * D * itemsize = sum of the issued copies).
    pltpu.make_async_copy(tok_buf.at[slot], tok_buf.at[slot], sem.at[slot]).wait()

    # ---- one vectorized add, lane-dense full-tile store.
    out_ref[...] = (tok_buf[slot] + seg_rows).astype(out_ref.dtype)


def embeddings_forward(x, seg, tok_embed, seg_embed, *, tile_n=1024):
    """x, seg: [B, S] integer ids.  tok_embed: [V, D].  seg_embed: [512, D]."""
    b, s = x.shape
    v, d = tok_embed.shape
    nseg, d_seg = seg_embed.shape
    assert d_seg == d, "token/segment embedding dims must match"

    n = b * s
    # Tile: multiple of 8 (f32 sublane tiling), never larger than the padded
    # problem.  (If tables were bf16, round to 16 instead.)
    tile = _round_up(min(tile_n, _round_up(n, 8)), 8)
    n_pad = _round_up(n, tile)
    num_tiles = n_pad // tile

    # Flatten + clip ids (avoids OOB HBM DMA sources); pad with id 0.
    tok_ids = jnp.zeros((n_pad,), jnp.int32).at[:n].set(
        jnp.clip(x.reshape(-1).astype(jnp.int32), 0, v - 1))
    seg_ids = jnp.zeros((n_pad, 1), jnp.int32).at[:n, 0].set(
        jnp.clip(seg.reshape(-1).astype(jnp.int32), 0, nseg - 1))

    itemsize = jnp.dtype(tok_embed.dtype).itemsize
    vmem_estimate = (
        4 * tile * d * itemsize      # double-buffered output + (2, tile, D) scratch
        + tile * nseg * 4            # one-hot intermediate
        + nseg * d * itemsize        # resident segment table
        + 4 * tile * 4               # segment-id blocks
    )
    vmem_limit = int(min(64 * 1024 * 1024,
                         max(32 * 1024 * 1024, 2 * vmem_estimate)))

    kernel = functools.partial(_embeddings_kernel, unroll=8)

    out = pl.pallas_call(
        kernel,
        out_shape=jax.ShapeDtypeStruct((n_pad, d), tok_embed.dtype),
        grid_spec=pltpu.PrefetchScalarGridSpec(
            num_scalar_prefetch=1,                      # tok_ids -> SMEM
            grid=(num_tiles,),
            in_specs=[
                pl.BlockSpec((tile, 1), lambda i, tok_ids: (i, 0)),   # seg ids
                pl.BlockSpec(memory_space=pl.ANY),                    # tok table (HBM)
                pl.BlockSpec((nseg, d), lambda i, tok_ids: (0, 0)),   # seg table (VMEM resident)
            ],
            out_specs=pl.BlockSpec((tile, d), lambda i, tok_ids: (i, 0)),
            scratch_shapes=[
                pltpu.VMEM((2, tile, d), tok_embed.dtype),   # token-row double buffer
                pltpu.SemaphoreType.DMA((2,)),               # per-slot DMA semaphores
            ],
        ),
        compiler_params=pltpu.CompilerParams(
            # "arbitrary": the double buffer / semaphores carry state across
            # grid steps, so the axis must run sequentially on one core.
            dimension_semantics=("arbitrary",),
            vmem_limit_bytes=vmem_limit,
        ),
    )(tok_ids, seg_ids, tok_embed, seg_embed)

    return out[:n].reshape(b, s, d)


if __name__ == "__main__":
    # Small config consistent with the module (cfg.vocab_size, cfg.dim).
    # D=128 keeps the output tile lane-dense (last dim multiple of 128).
    B, S = 2, 8
    VOCAB = 256
    DIM = 128
    NSEG = 512  # fixed in the module: nn.Embedding(512, cfg.dim)

    key = jax.random.PRNGKey(0)
    k_tok, k_seg, k_x, k_s = jax.random.split(key, 4)

    # nn.Embedding default init ~ N(0, 1)
    tok_embed = jax.random.normal(k_tok, (VOCAB, DIM), dtype=jnp.float32)
    seg_embed = jax.random.normal(k_seg, (NSEG, DIM), dtype=jnp.float32)

    x = jax.random.randint(k_x, (B, S), 0, VOCAB, dtype=jnp.int32)
    seg = jax.random.randint(k_s, (B, S), 0, NSEG, dtype=jnp.int32)

    out = embeddings_forward(x, seg, tok_embed, seg_embed)
    out = jax.block_until_ready(out)

    # Pure-JAX reference (gather semantics of nn.Embedding).
    ref = jnp.take(tok_embed, x, axis=0) + jnp.take(seg_embed, seg, axis=0)
    assert out.shape == (B, S, DIM)
    assert jnp.allclose(out, ref, atol=1e-5, rtol=1e-5), float(
        jnp.max(jnp.abs(out - ref)))

    print("KERNEL_OK")
</pallas_src>

<mosaic_0001>
module attributes {stable_mosaic.version = 11 : i64} {
  func.func @_embeddings_kernel(%arg0: i32, %arg1: memref<16xi32, #tpu.memory_space<smem>>, %arg2: memref<16x1xi32, #tpu.memory_space<vmem>>, %arg3: memref<256x128xf32, #tpu.memory_space<any>>, %arg4: memref<512x128xf32, #tpu.memory_space<vmem>>, %arg5: memref<16x128xf32, #tpu.memory_space<vmem>>, %arg6: memref<2x16x128xf32, #tpu.memory_space<vmem>>, %arg7: memref<2x!tpu.dma_semaphore, #tpu.memory_space<semaphore_mem>>) attributes {dimension_semantics = [#tpu.dimension_semantics<arbitrary>], iteration_bounds = array<i64: 1>, scalar_prefetch = 1 : i64, scratch_operands = 2 : i64, tpu.core_type = #tpu.core_type<tc>, window_params = [{transform_indices = @transform_0, window_bounds = array<i64: 16, 1>}, {}, {pipeline_mode = #tpu.pipeline_mode<synchronous>, transform_indices = @transform_2, window_bounds = array<i64: 512, 128>}, {transform_indices = @transform_3, window_bounds = array<i64: 16, 128>}]} {
    %c2_i32 = arith.constant 2 : i32
    %c0_i32 = arith.constant 0 : i32
    %0 = arith.cmpi eq, %c2_i32, %c0_i32 : i32
    %c1_i32 = arith.constant 1 : i32
    %1 = arith.select %0, %c1_i32, %c2_i32 : i32
    %2 = arith.remsi %arg0, %1 : i32
    %c0_i32_0 = arith.constant 0 : i32
    %3 = arith.cmpi ne, %2, %c0_i32_0 : i32
    %c0_i32_1 = arith.constant 0 : i32
    %4 = arith.cmpi slt, %2, %c0_i32_1 : i32
    %c0_i32_2 = arith.constant 0 : i32
    %5 = arith.cmpi slt, %1, %c0_i32_2 : i32
    %6 = arith.xori %4, %5 : i1
    %7 = arith.andi %6, %3 : i1
    %8 = arith.addi %2, %1 : i32
    %9 = arith.select %7, %8, %2 : i32
    %c0_i32_3 = arith.constant 0 : i32
    %10 = arith.cmpi eq, %arg0, %c0_i32_3 : i32
    %11 = arith.extui %10 : i1 to i32
    %c0_i32_4 = arith.constant 0 : i32
    %12 = arith.cmpi ne, %11, %c0_i32_4 : i32
    scf.if %12 {
      %c0_i32_19 = arith.constant 0 : i32
      %c2_i32_20 = arith.constant 2 : i32
      %37 = arith.addi %c0_i32_19, %c2_i32_20 : i32
      %c1_i32_21 = arith.constant 1 : i32
      scf.for %arg8 = %c0_i32_19 to %37 step %c1_i32_21  : i32 {
        %c1_i32_23 = arith.constant 1 : i32
        %38 = arith.muli %arg8, %c1_i32_23 : i32
        %c0_i32_24 = arith.constant 0 : i32
        %39 = arith.addi %c0_i32_24, %38 : i32
        %c8_i32 = arith.constant 8 : i32
        %40 = arith.muli %39, %c8_i32 : i32
        %41 = tpu.assume_multiple %40, 8 : i32
        %c0_i32_25 = arith.constant 0 : i32
        %42 = arith.addi %41, %c0_i32_25 : i32
        %c0_i32_26 = arith.constant 0 : i32
        %43 = arith.addi %c0_i32_26, %42 : i32
        %44 = arith.index_cast %43 : i32 to index
        %45 = memref.load %arg1[%44] : memref<16xi32, #tpu.memory_space<smem>>
        %c0_i32_27 = arith.constant 0 : i32
        %c0_i32_28 = arith.constant 0 : i32
        %c0_i32_29 = arith.constant 0 : i32
        %46 = tpu.memref_slice %arg3[%45, %c0_i32_29] : memref<256x128xf32, #tpu.memory_space<any>> -> memref<1x128xf32, #tpu.memory_space<any>>
        %c0_i32_30 = arith.constant 0 : i32
        %47 = tpu.memref_slice %arg6[%c0_i32_27, %42, %c0_i32_30] : memref<2x16x128xf32, #tpu.memory_space<vmem>> -> memref<1x1x128xf32, #tpu.memory_space<vmem>>
        %48 = tpu.memref_squeeze %47 : memref<1x1x128xf32, #tpu.memory_space<vmem>> -> memref<1x128xf32, #tpu.memory_space<vmem>>
        %49 = tpu.memref_slice %arg7[%c0_i32_28] : memref<2x!tpu.dma_semaphore, #tpu.memory_space<semaphore_mem>> -> memref<1x!tpu.dma_semaphore, #tpu.memory_space<semaphore_mem>>
        %50 = tpu.memref_squeeze %49 : memref<1x!tpu.dma_semaphore, #tpu.memory_space<semaphore_mem>> -> memref<!tpu.dma_semaphore, #tpu.memory_space<semaphore_mem>>
        tpu.enqueue_dma source(%46 : memref<1x128xf32, #tpu.memory_space<any>>) target(%48 : memref<1x128xf32, #tpu.memory_space<vmem>>) target_semaphore(%50 : memref<!tpu.dma_semaphore, #tpu.memory_space<semaphore_mem>>)
        %c1_i32_31 = arith.constant 1 : i32
        %51 = arith.addi %41, %c1_i32_31 : i32
        %c0_i32_32 = arith.constant 0 : i32
        %52 = arith.addi %c0_i32_32, %51 : i32
        %53 = arith.index_cast %52 : i32 to index
        %54 = memref.load %arg1[%53] : memref<16xi32, #tpu.memory_space<smem>>
        %c0_i32_33 = arith.constant 0 : i32
        %c0_i32_34 = arith.constant 0 : i32
        %c0_i32_35 = arith.constant 0 : i32
        %55 = tpu.memref_slice %arg3[%54, %c0_i32_35] : memref<256x128xf32, #tpu.memory_space<any>> -> memref<1x128xf32, #tpu.memory_space<any>>
        %c0_i32_36 = arith.constant 0 : i32
        %56 = tpu.memref_slice %arg6[%c0_i32_33, %51, %c0_i32_36] : memref<2x16x128xf32, #tpu.memory_space<vmem>> -> memref<1x1x128xf32, #tpu.memory_space<vmem>>
        %57 = tpu.memref_squeeze %56 : memref<1x1x128xf32, #tpu.memory_space<vmem>> -> memref<1x128xf32, #tpu.memory_space<vmem>>
        %58 = tpu.memref_slice %arg7[%c0_i32_34] : memref<2x!tpu.dma_semaphore, #tpu.memory_space<semaphore_mem>> -> memref<1x!tpu.dma_semaphore, #tpu.memory_space<semaphore_mem>>
        %59 = tpu.memref_squeeze %58 : memref<1x!tpu.dma_semaphore, #tpu.memory_space<semaphore_mem>> -> memref<!tpu.dma_semaphore, #tpu.memory_space<semaphore_mem>>
        tpu.enqueue_dma source(%55 : memref<1x128xf32, #tpu.memory_space<any>>) target(%57 : memref<1x128xf32, #tpu.memory_space<vmem>>) target_semaphore(%59 : memref<!tpu.dma_semaphore, #tpu.memory_space<semaphore_mem>>)
        %c2_i32_37 = arith.constant 2 : i32
        %60 = arith.addi %41, %c2_i32_37 : i32
        %c0_i32_38 = arith.constant 0 : i32
        %61 = arith.addi %c0_i32_38, %60 : i32
        %62 = arith.index_cast %61 : i32 to index
        %63 = memref.load %arg1[%62] : memref<16xi32, #tpu.memory_space<smem>>
        %c0_i32_39 = arith.constant 0 : i32
        %c0_i32_40 = arith.constant 0 : i32
        %c0_i32_41 = arith.constant 0 : i32
        %64 = tpu.memref_slice %arg3[%63, %c0_i32_41] : memref<256x128xf32, #tpu.memory_space<any>> -> memref<1x128xf32, #tpu.memory_space<any>>
        %c0_i32_42 = arith.constant 0 : i32
        %65 = tpu.memref_slice %arg6[%c0_i32_39, %60, %c0_i32_42] : memref<2x16x128xf32, #tpu.memory_space<vmem>> -> memref<1x1x128xf32, #tpu.memory_space<vmem>>
        %66 = tpu.memref_squeeze %65 : memref<1x1x128xf32, #tpu.memory_space<vmem>> -> memref<1x128xf32, #tpu.memory_space<vmem>>
        %67 = tpu.memref_slice %arg7[%c0_i32_40] : memref<2x!tpu.dma_semaphore, #tpu.memory_space<semaphore_mem>> -> memref<1x!tpu.dma_semaphore, #tpu.memory_space<semaphore_mem>>
        %68 = tpu.memref_squeeze %67 : memref<1x!tpu.dma_semaphore, #tpu.memory_space<semaphore_mem>> -> memref<!tpu.dma_semaphore, #tpu.memory_space<semaphore_mem>>
        tpu.enqueue_dma source(%64 : memref<1x128xf32, #tpu.memory_space<any>>) target(%66 : memref<1x128xf32, #tpu.memory_space<vmem>>) target_semaphore(%68 : memref<!tpu.dma_semaphore, #tpu.memory_space<semaphore_mem>>)
        %c3_i32 = arith.constant 3 : i32
        %69 = arith.addi %41, %c3_i32 : i32
        %c0_i32_43 = arith.constant 0 : i32
        %70 = arith.addi %c0_i32_43, %69 : i32
        %71 = arith.index_cast %70 : i32 to index
        %72 = memref.load %arg1[%71] : memref<16xi32, #tpu.memory_space<smem>>
        %c0_i32_44 = arith.constant 0 : i32
        %c0_i32_45 = arith.constant 0 : i32
        %c0_i32_46 = arith.constant 0 : i32
        %73 = tpu.memref_slice %arg3[%72, %c0_i32_46] : memref<256x128xf32, #tpu.memory_space<any>> -> memref<1x128xf32, #tpu.memory_space<any>>
        %c0_i32_47 = arith.constant 0 : i32
        %74 = tpu.memref_slice %arg6[%c0_i32_44, %69, %c0_i32_47] : memref<2x16x128xf32, #tpu.memory_space<vmem>> -> memref<1x1x128xf32, #tpu.memory_space<vmem>>
        %75 = tpu.memref_squeeze %74 : memref<1x1x128xf32, #tpu.memory_space<vmem>> -> memref<1x128xf32, #tpu.memory_space<vmem>>
        %76 = tpu.memref_slice %arg7[%c0_i32_45] : memref<2x!tpu.dma_semaphore, #tpu.memory_space<semaphore_mem>> -> memref<1x!tpu.dma_semaphore, #tpu.memory_space<semaphore_mem>>
        %77 = tpu.memref_squeeze %76 : memref<1x!tpu.dma_semaphore, #tpu.memory_space<semaphore_mem>> -> memref<!tpu.dma_semaphore, #tpu.memory_space<semaphore_mem>>
        tpu.enqueue_dma source(%73 : memref<1x128xf32, #tpu.memory_space<any>>) target(%75 : memref<1x128xf32, #tpu.memory_space<vmem>>) target_semaphore(%77 : memref<!tpu.dma_semaphore, #tpu.memory_space<semaphore_mem>>)
        %c4_i32 = arith.constant 4 : i32
        %78 = arith.addi %41, %c4_i32 : i32
        %c0_i32_48 = arith.constant 0 : i32
        %79 = arith.addi %c0_i32_48, %78 : i32
        %80 = arith.index_cast %79 : i32 to index
        %81 = memref.load %arg1[%80] : memref<16xi32, #tpu.memory_space<smem>>
        %c0_i32_49 = arith.constant 0 : i32
        %c0_i32_50 = arith.constant 0 : i32
        %c0_i32_51 = arith.constant 0 : i32
        %82 = tpu.memref_slice %arg3[%81, %c0_i32_51] : memref<256x128xf32, #tpu.memory_space<any>> -> memref<1x128xf32, #tpu.memory_space<any>>
        %c0_i32_52 = arith.constant 0 : i32
        %83 = tpu.memref_slice %arg6[%c0_i32_49, %78, %c0_i32_52] : memref<2x16x128xf32, #tpu.memory_space<vmem>> -> memref<1x1x128xf32, #tpu.memory_space<vmem>>
        %84 = tpu.memref_squeeze %83 : memref<1x1x128xf32, #tpu.memory_space<vmem>> -> memref<1x128xf32, #tpu.memory_space<vmem>>
        %85 = tpu.memref_slice %arg7[%c0_i32_50] : memref<2x!tpu.dma_semaphore, #tpu.memory_space<semaphore_mem>> -> memref<1x!tpu.dma_semaphore, #tpu.memory_space<semaphore_mem>>
        %86 = tpu.memref_squeeze %85 : memref<1x!tpu.dma_semaphore, #tpu.memory_space<semaphore_mem>> -> memref<!tpu.dma_semaphore, #tpu.memory_space<semaphore_mem>>
        tpu.enqueue_dma source(%82 : memref<1x128xf32, #tpu.memory_space<any>>) target(%84 : memref<1x128xf32, #tpu.memory_space<vmem>>) target_semaphore(%86 : memref<!tpu.dma_semaphore, #tpu.memory_space<semaphore_mem>>)
        %c5_i32 = arith.constant 5 : i32
        %87 = arith.addi %41, %c5_i32 : i32
        %c0_i32_53 = arith.constant 0 : i32
        %88 = arith.addi %c0_i32_53, %87 : i32
        %89 = arith.index_cast %88 : i32 to index
        %90 = memref.load %arg1[%89] : memref<16xi32, #tpu.memory_space<smem>>
        %c0_i32_54 = arith.constant 0 : i32
        %c0_i32_55 = arith.constant 0 : i32
        %c0_i32_56 = arith.constant 0 : i32
        %91 = tpu.memref_slice %arg3[%90, %c0_i32_56] : memref<256x128xf32, #tpu.memory_space<any>> -> memref<1x128xf32, #tpu.memory_space<any>>
        %c0_i32_57 = arith.constant 0 : i32
        %92 = tpu.memref_slice %arg6[%c0_i32_54, %87, %c0_i32_57] : memref<2x16x128xf32, #tpu.memory_space<vmem>> -> memref<1x1x128xf32, #tpu.memory_space<vmem>>
        %93 = tpu.memref_squeeze %92 : memref<1x1x128xf32, #tpu.memory_space<vmem>> -> memref<1x128xf32, #tpu.memory_space<vmem>>
        %94 = tpu.memref_slice %arg7[%c0_i32_55] : memref<2x!tpu.dma_semaphore, #tpu.memory_space<semaphore_mem>> -> memref<1x!tpu.dma_semaphore, #tpu.memory_space<semaphore_mem>>
        %95 = tpu.memref_squeeze %94 : memref<1x!tpu.dma_semaphore, #tpu.memory_space<semaphore_mem>> -> memref<!tpu.dma_semaphore, #tpu.memory_space<semaphore_mem>>
        tpu.enqueue_dma source(%91 : memref<1x128xf32, #tpu.memory_space<any>>) target(%93 : memref<1x128xf32, #tpu.memory_space<vmem>>) target_semaphore(%95 : memref<!tpu.dma_semaphore, #tpu.memory_space<semaphore_mem>>)
        %c6_i32 = arith.constant 6 : i32
        %96 = arith.addi %41, %c6_i32 : i32
        %c0_i32_58 = arith.constant 0 : i32
        %97 = arith.addi %c0_i32_58, %96 : i32
        %98 = arith.index_cast %97 : i32 to index
        %99 = memref.load %arg1[%98] : memref<16xi32, #tpu.memory_space<smem>>
        %c0_i32_59 = arith.constant 0 : i32
        %c0_i32_60 = arith.constant 0 : i32
        %c0_i32_61 = arith.constant 0 : i32
        %100 = tpu.memref_slice %arg3[%99, %c0_i32_61] : memref<256x128xf32, #tpu.memory_space<any>> -> memref<1x128xf32, #tpu.memory_space<any>>
        %c0_i32_62 = arith.constant 0 : i32
        %101 = tpu.memref_slice %arg6[%c0_i32_59, %96, %c0_i32_62] : memref<2x16x128xf32, #tpu.memory_space<vmem>> -> memref<1x1x128xf32, #tpu.memory_space<vmem>>
        %102 = tpu.memref_squeeze %101 : memref<1x1x128xf32, #tpu.memory_space<vmem>> -> memref<1x128xf32, #tpu.memory_space<vmem>>
        %103 = tpu.memref_slice %arg7[%c0_i32_60] : memref<2x!tpu.dma_semaphore, #tpu.memory_space<semaphore_mem>> -> memref<1x!tpu.dma_semaphore, #tpu.memory_space<semaphore_mem>>
        %104 = tpu.memref_squeeze %103 : memref<1x!tpu.dma_semaphore, #tpu.memory_space<semaphore_mem>> -> memref<!tpu.dma_semaphore, #tpu.memory_space<semaphore_mem>>
        tpu.enqueue_dma source(%100 : memref<1x128xf32, #tpu.memory_space<any>>) target(%102 : memref<1x128xf32, #tpu.memory_space<vmem>>) target_semaphore(%104 : memref<!tpu.dma_semaphore, #tpu.memory_space<semaphore_mem>>)
        %c7_i32 = arith.constant 7 : i32
        %105 = arith.addi %41, %c7_i32 : i32
        %c0_i32_63 = arith.constant 0 : i32
        %106 = arith.addi %c0_i32_63, %105 : i32
        %107 = arith.index_cast %106 : i32 to index
        %108 = memref.load %arg1[%107] : memref<16xi32, #tpu.memory_space<smem>>
        %c0_i32_64 = arith.constant 0 : i32
        %c0_i32_65 = arith.constant 0 : i32
        %c0_i32_66 = arith.constant 0 : i32
        %109 = tpu.memref_slice %arg3[%108, %c0_i32_66] : memref<256x128xf32, #tpu.memory_space<any>> -> memref<1x128xf32, #tpu.memory_space<any>>
        %c0_i32_67 = arith.constant 0 : i32
        %110 = tpu.memref_slice %arg6[%c0_i32_64, %105, %c0_i32_67] : memref<2x16x128xf32, #tpu.memory_space<vmem>> -> memref<1x1x128xf32, #tpu.memory_space<vmem>>
        %111 = tpu.memref_squeeze %110 : memref<1x1x128xf32, #tpu.memory_space<vmem>> -> memref<1x128xf32, #tpu.memory_space<vmem>>
        %112 = tpu.memref_slice %arg7[%c0_i32_65] : memref<2x!tpu.dma_semaphore, #tpu.memory_space<semaphore_mem>> -> memref<1x!tpu.dma_semaphore, #tpu.memory_space<semaphore_mem>>
        %113 = tpu.memref_squeeze %112 : memref<1x!tpu.dma_semaphore, #tpu.memory_space<semaphore_mem>> -> memref<!tpu.dma_semaphore, #tpu.memory_space<semaphore_mem>>
        tpu.enqueue_dma source(%109 : memref<1x128xf32, #tpu.memory_space<any>>) target(%111 : memref<1x128xf32, #tpu.memory_space<vmem>>) target_semaphore(%113 : memref<!tpu.dma_semaphore, #tpu.memory_space<semaphore_mem>>)
      }
      %c2_i32_22 = arith.constant 2 : i32
    } else {
    }
    %c1_i32_5 = arith.constant 1 : i32
    %13 = arith.addi %arg0, %c1_i32_5 : i32
    %c1_i32_6 = arith.constant 1 : i32
    %14 = arith.cmpi slt, %13, %c1_i32_6 : i32
    %15 = arith.extui %14 : i1 to i32
    %c0_i32_7 = arith.constant 0 : i32
    %16 = arith.cmpi ne, %15, %c0_i32_7 : i32
    scf.if %16 {
      %c1_i32_19 = arith.constant 1 : i32
      %37 = arith.addi %arg0, %c1_i32_19 : i32
      %c1_i32_20 = arith.constant 1 : i32
      %38 = arith.subi %c1_i32_20, %9 : i32
      %c16_i32 = arith.constant 16 : i32
      %39 = arith.muli %37, %c16_i32 : i32
      %c0_i32_21 = arith.constant 0 : i32
      %c2_i32_22 = arith.constant 2 : i32
      %40 = arith.addi %c0_i32_21, %c2_i32_22 : i32
      %c1_i32_23 = arith.constant 1 : i32
      scf.for %arg8 = %c0_i32_21 to %40 step %c1_i32_23  : i32 {
        %c1_i32_25 = arith.constant 1 : i32
        %41 = arith.muli %arg8, %c1_i32_25 : i32
        %c0_i32_26 = arith.constant 0 : i32
        %42 = arith.addi %c0_i32_26, %41 : i32
        %c8_i32 = arith.constant 8 : i32
        %43 = arith.muli %42, %c8_i32 : i32
        %44 = tpu.assume_multiple %43, 8 : i32
        %c0_i32_27 = arith.constant 0 : i32
        %45 = arith.addi %44, %c0_i32_27 : i32
        %46 = arith.addi %39, %45 : i32
        %47 = arith.index_cast %46 : i32 to index
        %48 = memref.load %arg1[%47] : memref<16xi32, #tpu.memory_space<smem>>
        %c0_i32_28 = arith.constant 0 : i32
        %49 = tpu.memref_slice %arg3[%48, %c0_i32_28] : memref<256x128xf32, #tpu.memory_space<any>> -> memref<1x128xf32, #tpu.memory_space<any>>
        %c0_i32_29 = arith.constant 0 : i32
        %50 = tpu.memref_slice %arg6[%38, %45, %c0_i32_29] : memref<2x16x128xf32, #tpu.memory_space<vmem>> -> memref<1x1x128xf32, #tpu.memory_space<vmem>>
        %51 = tpu.memref_squeeze %50 : memref<1x1x128xf32, #tpu.memory_space<vmem>> -> memref<1x128xf32, #tpu.memory_space<vmem>>
        %52 = tpu.memref_slice %arg7[%38] : memref<2x!tpu.dma_semaphore, #tpu.memory_space<semaphore_mem>> -> memref<1x!tpu.dma_semaphore, #tpu.memory_space<semaphore_mem>>
        %53 = tpu.memref_squeeze %52 : memref<1x!tpu.dma_semaphore, #tpu.memory_space<semaphore_mem>> -> memref<!tpu.dma_semaphore, #tpu.memory_space<semaphore_mem>>
        tpu.enqueue_dma source(%49 : memref<1x128xf32, #tpu.memory_space<any>>) target(%51 : memref<1x128xf32, #tpu.memory_space<vmem>>) target_semaphore(%53 : memref<!tpu.dma_semaphore, #tpu.memory_space<semaphore_mem>>)
        %c1_i32_30 = arith.constant 1 : i32
        %54 = arith.addi %44, %c1_i32_30 : i32
        %55 = arith.addi %39, %54 : i32
        %56 = arith.index_cast %55 : i32 to index
        %57 = memref.load %arg1[%56] : memref<16xi32, #tpu.memory_space<smem>>
        %c0_i32_31 = arith.constant 0 : i32
        %58 = tpu.memref_slice %arg3[%57, %c0_i32_31] : memref<256x128xf32, #tpu.memory_space<any>> -> memref<1x128xf32, #tpu.memory_space<any>>
        %c0_i32_32 = arith.constant 0 : i32
        %59 = tpu.memref_slice %arg6[%38, %54, %c0_i32_32] : memref<2x16x128xf32, #tpu.memory_space<vmem>> -> memref<1x1x128xf32, #tpu.memory_space<vmem>>
        %60 = tpu.memref_squeeze %59 : memref<1x1x128xf32, #tpu.memory_space<vmem>> -> memref<1x128xf32, #tpu.memory_space<vmem>>
        %61 = tpu.memref_slice %arg7[%38] : memref<2x!tpu.dma_semaphore, #tpu.memory_space<semaphore_mem>> -> memref<1x!tpu.dma_semaphore, #tpu.memory_space<semaphore_mem>>
        %62 = tpu.memref_squeeze %61 : memref<1x!tpu.dma_semaphore, #tpu.memory_space<semaphore_mem>> -> memref<!tpu.dma_semaphore, #tpu.memory_space<semaphore_mem>>
        tpu.enqueue_dma source(%58 : memref<1x128xf32, #tpu.memory_space<any>>) target(%60 : memref<1x128xf32, #tpu.memory_space<vmem>>) target_semaphore(%62 : memref<!tpu.dma_semaphore, #tpu.memory_space<semaphore_mem>>)
        %c2_i32_33 = arith.constant 2 : i32
        %63 = arith.addi %44, %c2_i32_33 : i32
        %64 = arith.addi %39, %63 : i32
        %65 = arith.index_cast %64 : i32 to index
        %66 = memref.load %arg1[%65] : memref<16xi32, #tpu.memory_space<smem>>
        %c0_i32_34 = arith.constant 0 : i32
        %67 = tpu.memref_slice %arg3[%66, %c0_i32_34] : memref<256x128xf32, #tpu.memory_space<any>> -> memref<1x128xf32, #tpu.memory_space<any>>
        %c0_i32_35 = arith.constant 0 : i32
        %68 = tpu.memref_slice %arg6[%38, %63, %c0_i32_35] : memref<2x16x128xf32, #tpu.memory_space<vmem>> -> memref<1x1x128xf32, #tpu.memory_space<vmem>>
        %69 = tpu.memref_squeeze %68 : memref<1x1x128xf32, #tpu.memory_space<vmem>> -> memref<1x128xf32, #tpu.memory_space<vmem>>
        %70 = tpu.memref_slice %arg7[%38] : memref<2x!tpu.dma_semaphore, #tpu.memory_space<semaphore_mem>> -> memref<1x!tpu.dma_semaphore, #tpu.memory_space<semaphore_mem>>
        %71 = tpu.memref_squeeze %70 : memref<1x!tpu.dma_semaphore, #tpu.memory_space<semaphore_mem>> -> memref<!tpu.dma_semaphore, #tpu.memory_space<semaphore_mem>>
        tpu.enqueue_dma source(%67 : memref<1x128xf32, #tpu.memory_space<any>>) target(%69 : memref<1x128xf32, #tpu.memory_space<vmem>>) target_semaphore(%71 : memref<!tpu.dma_semaphore, #tpu.memory_space<semaphore_mem>>)
        %c3_i32 = arith.constant 3 : i32
        %72 = arith.addi %44, %c3_i32 : i32
        %73 = arith.addi %39, %72 : i32
        %74 = arith.index_cast %73 : i32 to index
        %75 = memref.load %arg1[%74] : memref<16xi32, #tpu.memory_space<smem>>
        %c0_i32_36 = arith.constant 0 : i32
        %76 = tpu.memref_slice %arg3[%75, %c0_i32_36] : memref<256x128xf32, #tpu.memory_space<any>> -> memref<1x128xf32, #tpu.memory_space<any>>
        %c0_i32_37 = arith.constant 0 : i32
        %77 = tpu.memref_slice %arg6[%38, %72, %c0_i32_37] : memref<2x16x128xf32, #tpu.memory_space<vmem>> -> memref<1x1x128xf32, #tpu.memory_space<vmem>>
        %78 = tpu.memref_squeeze %77 : memref<1x1x128xf32, #tpu.memory_space<vmem>> -> memref<1x128xf32, #tpu.memory_space<vmem>>
        %79 = tpu.memref_slice %arg7[%38] : memref<2x!tpu.dma_semaphore, #tpu.memory_space<semaphore_mem>> -> memref<1x!tpu.dma_semaphore, #tpu.memory_space<semaphore_mem>>
        %80 = tpu.memref_squeeze %79 : memref<1x!tpu.dma_semaphore, #tpu.memory_space<semaphore_mem>> -> memref<!tpu.dma_semaphore, #tpu.memory_space<semaphore_mem>>
        tpu.enqueue_dma source(%76 : memref<1x128xf32, #tpu.memory_space<any>>) target(%78 : memref<1x128xf32, #tpu.memory_space<vmem>>) target_semaphore(%80 : memref<!tpu.dma_semaphore, #tpu.memory_space<semaphore_mem>>)
        %c4_i32 = arith.constant 4 : i32
        %81 = arith.addi %44, %c4_i32 : i32
        %82 = arith.addi %39, %81 : i32
        %83 = arith.index_cast %82 : i32 to index
        %84 = memref.load %arg1[%83] : memref<16xi32, #tpu.memory_space<smem>>
        %c0_i32_38 = arith.constant 0 : i32
        %85 = tpu.memref_slice %arg3[%84, %c0_i32_38] : memref<256x128xf32, #tpu.memory_space<any>> -> memref<1x128xf32, #tpu.memory_space<any>>
        %c0_i32_39 = arith.constant 0 : i32
        %86 = tpu.memref_slice %arg6[%38, %81, %c0_i32_39] : memref<2x16x128xf32, #tpu.memory_space<vmem>> -> memref<1x1x128xf32, #tpu.memory_space<vmem>>
        %87 = tpu.memref_squeeze %86 : memref<1x1x128xf32, #tpu.memory_space<vmem>> -> memref<1x128xf32, #tpu.memory_space<vmem>>
        %88 = tpu.memref_slice %arg7[%38] : memref<2x!tpu.dma_semaphore, #tpu.memory_space<semaphore_mem>> -> memref<1x!tpu.dma_semaphore, #tpu.memory_space<semaphore_mem>>
        %89 = tpu.memref_squeeze %88 : memref<1x!tpu.dma_semaphore, #tpu.memory_space<semaphore_mem>> -> memref<!tpu.dma_semaphore, #tpu.memory_space<semaphore_mem>>
        tpu.enqueue_dma source(%85 : memref<1x128xf32, #tpu.memory_space<any>>) target(%87 : memref<1x128xf32, #tpu.memory_space<vmem>>) target_semaphore(%89 : memref<!tpu.dma_semaphore, #tpu.memory_space<semaphore_mem>>)
        %c5_i32 = arith.constant 5 : i32
        %90 = arith.addi %44, %c5_i32 : i32
        %91 = arith.addi %39, %90 : i32
        %92 = arith.index_cast %91 : i32 to index
        %93 = memref.load %arg1[%92] : memref<16xi32, #tpu.memory_space<smem>>
        %c0_i32_40 = arith.constant 0 : i32
        %94 = tpu.memref_slice %arg3[%93, %c0_i32_40] : memref<256x128xf32, #tpu.memory_space<any>> -> memref<1x128xf32, #tpu.memory_space<any>>
        %c0_i32_41 = arith.constant 0 : i32
        %95 = tpu.memref_slice %arg6[%38, %90, %c0_i32_41] : memref<2x16x128xf32, #tpu.memory_space<vmem>> -> memref<1x1x128xf32, #tpu.memory_space<vmem>>
        %96 = tpu.memref_squeeze %95 : memref<1x1x128xf32, #tpu.memory_space<vmem>> -> memref<1x128xf32, #tpu.memory_space<vmem>>
        %97 = tpu.memref_slice %arg7[%38] : memref<2x!tpu.dma_semaphore, #tpu.memory_space<semaphore_mem>> -> memref<1x!tpu.dma_semaphore, #tpu.memory_space<semaphore_mem>>
        %98 = tpu.memref_squeeze %97 : memref<1x!tpu.dma_semaphore, #tpu.memory_space<semaphore_mem>> -> memref<!tpu.dma_semaphore, #tpu.memory_space<semaphore_mem>>
        tpu.enqueue_dma source(%94 : memref<1x128xf32, #tpu.memory_space<any>>) target(%96 : memref<1x128xf32, #tpu.memory_space<vmem>>) target_semaphore(%98 : memref<!tpu.dma_semaphore, #tpu.memory_space<semaphore_mem>>)
        %c6_i32 = arith.constant 6 : i32
        %99 = arith.addi %44, %c6_i32 : i32
        %100 = arith.addi %39, %99 : i32
        %101 = arith.index_cast %100 : i32 to index
        %102 = memref.load %arg1[%101] : memref<16xi32, #tpu.memory_space<smem>>
        %c0_i32_42 = arith.constant 0 : i32
        %103 = tpu.memref_slice %arg3[%102, %c0_i32_42] : memref<256x128xf32, #tpu.memory_space<any>> -> memref<1x128xf32, #tpu.memory_space<any>>
        %c0_i32_43 = arith.constant 0 : i32
        %104 = tpu.memref_slice %arg6[%38, %99, %c0_i32_43] : memref<2x16x128xf32, #tpu.memory_space<vmem>> -> memref<1x1x128xf32, #tpu.memory_space<vmem>>
        %105 = tpu.memref_squeeze %104 : memref<1x1x128xf32, #tpu.memory_space<vmem>> -> memref<1x128xf32, #tpu.memory_space<vmem>>
        %106 = tpu.memref_slice %arg7[%38] : memref<2x!tpu.dma_semaphore, #tpu.memory_space<semaphore_mem>> -> memref<1x!tpu.dma_semaphore, #tpu.memory_space<semaphore_mem>>
        %107 = tpu.memref_squeeze %106 : memref<1x!tpu.dma_semaphore, #tpu.memory_space<semaphore_mem>> -> memref<!tpu.dma_semaphore, #tpu.memory_space<semaphore_mem>>
        tpu.enqueue_dma source(%103 : memref<1x128xf32, #tpu.memory_space<any>>) target(%105 : memref<1x128xf32, #tpu.memory_space<vmem>>) target_semaphore(%107 : memref<!tpu.dma_semaphore, #tpu.memory_space<semaphore_mem>>)
        %c7_i32 = arith.constant 7 : i32
        %108 = arith.addi %44, %c7_i32 : i32
        %109 = arith.addi %39, %108 : i32
        %110 = arith.index_cast %109 : i32 to index
        %111 = memref.load %arg1[%110] : memref<16xi32, #tpu.memory_space<smem>>
        %c0_i32_44 = arith.constant 0 : i32
        %112 = tpu.memref_slice %arg3[%111, %c0_i32_44] : memref<256x128xf32, #tpu.memory_space<any>> -> memref<1x128xf32, #tpu.memory_space<any>>
        %c0_i32_45 = arith.constant 0 : i32
        %113 = tpu.memref_slice %arg6[%38, %108, %c0_i32_45] : memref<2x16x128xf32, #tpu.memory_space<vmem>> -> memref<1x1x128xf32, #tpu.memory_space<vmem>>
        %114 = tpu.memref_squeeze %113 : memref<1x1x128xf32, #tpu.memory_space<vmem>> -> memref<1x128xf32, #tpu.memory_space<vmem>>
        %115 = tpu.memref_slice %arg7[%38] : memref<2x!tpu.dma_semaphore, #tpu.memory_space<semaphore_mem>> -> memref<1x!tpu.dma_semaphore, #tpu.memory_space<semaphore_mem>>
        %116 = tpu.memref_squeeze %115 : memref<1x!tpu.dma_semaphore, #tpu.memory_space<semaphore_mem>> -> memref<!tpu.dma_semaphore, #tpu.memory_space<semaphore_mem>>
        tpu.enqueue_dma source(%112 : memref<1x128xf32, #tpu.memory_space<any>>) target(%114 : memref<1x128xf32, #tpu.memory_space<vmem>>) target_semaphore(%116 : memref<!tpu.dma_semaphore, #tpu.memory_space<semaphore_mem>>)
      }
      %c2_i32_24 = arith.constant 2 : i32
    } else {
    }
    %c0 = arith.constant 0 : index
    %c0_8 = arith.constant 0 : index
    %17 = vector.load %arg2[%c0, %c0_8] : memref<16x1xi32, #tpu.memory_space<vmem>>, vector<16x1xi32>
    %18 = vector.shape_cast %17 : vector<16x1xi32> to vector<16x1xi32>
    %19 = vector.broadcast %18 : vector<16x1xi32> to vector<16x512xi32>
    %20 = tpu.iota {dimensions = array<i32: 1>} : vector<16x512xi32>
    %21 = arith.cmpi eq, %19, %20 : vector<16x512xi32>
    %22 = arith.extui %21 : vector<16x512xi1> to vector<16x512xi32>
    %23 = arith.sitofp %22 : vector<16x512xi32> to vector<16x512xf32>
    %c0_9 = arith.constant 0 : index
    %c0_10 = arith.constant 0 : index
    %24 = vector.load %arg4[%c0_9, %c0_10] : memref<512x128xf32, #tpu.memory_space<vmem>>, vector<512x128xf32>
    %cst = arith.constant dense<0.000000e+00> : vector<16x128xf32>
    %25 = tpu.matmul %23, %24, %cst {dimension_numbers = #tpu.dot_dimension_numbers<[1], [0], [0], [1], [0, 0, 1, 1], [], []>, precision = #tpu.contract_precision<fp32>} : vector<16x512xf32>, vector<512x128xf32>, vector<16x128xf32> -> vector<16x128xf32>
    %c0_i32_11 = arith.constant 0 : i32
    %c0_i32_12 = arith.constant 0 : i32
    %26 = tpu.memref_slice %arg6[%9, %c0_i32_11, %c0_i32_12] : memref<2x16x128xf32, #tpu.memory_space<vmem>> -> memref<1x16x128xf32, #tpu.memory_space<vmem>>
    %27 = tpu.memref_squeeze %26 : memref<1x16x128xf32, #tpu.memory_space<vmem>> -> memref<16x128xf32, #tpu.memory_space<vmem>>
    %c0_i32_13 = arith.constant 0 : i32
    %c0_i32_14 = arith.constant 0 : i32
    %28 = tpu.memref_slice %arg6[%9, %c0_i32_13, %c0_i32_14] : memref<2x16x128xf32, #tpu.memory_space<vmem>> -> memref<1x16x128xf32, #tpu.memory_space<vmem>>
    %29 = tpu.memref_squeeze %28 : memref<1x16x128xf32, #tpu.memory_space<vmem>> -> memref<16x128xf32, #tpu.memory_space<vmem>>
    %30 = tpu.memref_slice %arg7[%9] : memref<2x!tpu.dma_semaphore, #tpu.memory_space<semaphore_mem>> -> memref<1x!tpu.dma_semaphore, #tpu.memory_space<semaphore_mem>>
    %31 = tpu.memref_squeeze %30 : memref<1x!tpu.dma_semaphore, #tpu.memory_space<semaphore_mem>> -> memref<!tpu.dma_semaphore, #tpu.memory_space<semaphore_mem>>
    tpu.wait_dma2 semaphore(%31 : memref<!tpu.dma_semaphore, #tpu.memory_space<semaphore_mem>>) src(%27 : memref<16x128xf32, #tpu.memory_space<vmem>>) dst(%29 : memref<16x128xf32, #tpu.memory_space<vmem>>)
    %32 = arith.index_cast %9 : i32 to index
    %c0_15 = arith.constant 0 : index
    %c0_16 = arith.constant 0 : index
    %33 = vector.load %arg6[%32, %c0_15, %c0_16] : memref<2x16x128xf32, #tpu.memory_space<vmem>>, vector<1x16x128xf32>
    %34 = vector.shape_cast %33 : vector<1x16x128xf32> to vector<16x128xf32>
    %35 = arith.addf %34, %25 : vector<16x128xf32>
    %c0_17 = arith.constant 0 : index
    %c0_18 = arith.constant 0 : index
    %36 = vector.load %arg5[%c0_17, %c0_18] : memref<16x128xf32, #tpu.memory_space<vmem>>, vector<16x128xf32>
    tpu.vector_store %arg5[%c0_17, %c0_18], %35 {strides = array<i32>} : memref<16x128xf32, #tpu.memory_space<vmem>>, vector<16x128xf32>,
    return
  }
  func.func @transform_0(%arg0: i32, %arg1: memref<16xi32, #tpu.memory_space<smem>>) -> (i32, i32) {
    %c0_i32 = arith.constant 0 : i32
    %c0_i32_0 = arith.constant 0 : i32
    return %arg0, %c0_i32 : i32, i32
  }
  func.func @transform_2(%arg0: i32, %arg1: memref<16xi32, #tpu.memory_space<smem>>) -> (i32, i32) {
    %c0_i32 = arith.constant 0 : i32
    %c0_i32_0 = arith.constant 0 : i32
    %c0_i32_1 = arith.constant 0 : i32
    return %c0_i32, %c0_i32_0 : i32, i32
  }
  func.func @transform_3(%arg0: i32, %arg1: memref<16xi32, #tpu.memory_space<smem>>) -> (i32, i32) {
    %c0_i32 = arith.constant 0 : i32
    %c0_i32_0 = arith.constant 0 : i32
    return %arg0, %c0_i32 : i32, i32
  }
}

</mosaic_0001>

<bundles_post_ra>
// kernel: tpu_custom_call.1
= control target key start
LH: loop header
LB: loop body
LE: loop exit
PB: predicated region body
PF: predicated region fallthrough
CT: control target
= control target key end

     0   :  { %s5382_s0 = inlined_call_operand.vmem [shape: s32[16], index: 0, kind: input, shape index: {}]   ;;  %s5383_s1 = inlined_call_operand.vmem [shape: s32[16,1], index: 1, kind: input, shape index: {}]   ;;  %s5384_s2 = inlined_call_operand.hbm [shape: f32[256,128], index: 2, kind: input, shape index: {}]   ;;  %s5385_s3 = inlined_call_operand.hbm [shape: f32[512,128], index: 3, kind: input, shape index: {}]   ;;  %s5386_s4 = inlined_call_operand.hbm [shape: f32[16,128], index: 4, kind: output, shape index: {}]  }
   0x1   :  { %s9_s17 = sshll.u32 %s5382_s0, 4  ;;  %s10_s17 = int_to_ptr.vmem [resolvable:$true] %s9_s17 }
   0x2   :  { %s3380_s18 = scalar_lea.vmem %s10_s17, 16  ;;  %p3385_p1 = scmp.lt.s32.totalorder %s10_s17, %s10_s17 }
   0x3   :  { %p3381_p0 = scmp.ne.s32.totalorder %s10_s17, %s3380_s18  ;;  %p3386_p2 = scmp.lt.s32.totalorder %s3380_s18, %s3380_s18 }
   0x5   :  { %p3387_p3 = por %p3386_p2, %p3385_p1 }
   0x7   :  { %p3388_p4 = pnand %p3387_p3, %p3381_p0 }
   0x9   :  { %3391 = shalt.err (!%p3388_p4)  }
   0xa   :  { %s3644_s19 = smov [#allocation5]  }
   0xb   :  { %12 = dma.vmem_to_smem %s10_s17, 16, %s3644_s19, [#allocation4] }
   0xc   :  { %3632 = dma.done.wait [#allocation4], 16 }
   0xd   :  { %3633 = vsyncadd [#allocation4], 4294967280 }
   0xe   :  { %14 = sfence }
   0xf   :  { %15 = vsyncpa [#allocation7], 0 }
  0x10   :  { %16 = vsyncpa [#allocation8], 0  ;;  %s3645_s20 = smov [#allocation6]   ;;  %s3392_s23 = scalar_lea.hbm %s5385_s3, 8192 }
  0x11   :  { %s24_s21 = sshll.u32 %s3645_s20, 4  ;;  %p3393_p5 = scmp.ne.s32.totalorder %s5385_s3, %s3392_s23  ;;  %s25_s21 = int_to_ptr.vmem [resolvable:$true] %s24_s21 }
  0x12   :  { %p3396_p6 = scmp.lt.u32.totalorder %s3392_s23, %s5385_s3 }
  0x14   :  { %p3398_p7 = pnand %p3396_p6, %p3393_p5 }
  0x16   :  { %3401 = shalt.err (!%p3398_p7)
}
  0x17   :  { %s3402_s28 = scalar_lea.vmem %s25_s21, 8192  ;;  %p3407_p9 = scmp.lt.s32.totalorder %s25_s21, %s25_s21 }
  0x18   :  { %p3403_p8 = scmp.ne.s32.totalorder %s25_s21, %s3402_s28  ;;  %p3408_p10 = scmp.lt.s32.totalorder %s3402_s28, %s3402_s28 }
  0x1a   :  { %p3409_p11 = por %p3408_p10, %p3407_p9 }
  0x1c   :  { %p3410_p12 = pnand %p3409_p11, %p3403_p8 }
  0x1e   :  { %3413 = shalt.err (!%p3410_p12)
}
  0x1f   :  { %s3646_s29 = smov 128   ;;  %s3647_s30 = smov 8  }
  0x20   :  { %30 = dma.hbm_to_vmem [thread:$0]  %s5385_s3, 8192, %s25_s21, [#allocation7], %s3646_s29, %s3646_s29, %s3647_s30  }
  0x21   :  { %3634 = dma.done.wait [#allocation7], 8192  }
  0x22   :  { %3635 = vsyncadd [#allocation7], 4294959104  ;;  %s3696_s7 = smov 0  }
  0x23 LB: > { %s3702_s8 = sshll.u32 %s3642_s7, 3  ;;  %s3729_s25 = scalar_lea.hbm %s5384_s2, 4096  ;;  %s3642_s7 = sphi %s3696_s7, %s51_s7  }
  0x24   : > { %s53_s9 = sld [smem:[#allocation5 + %s3702_s8]]  ;;  %s3706_s10 = scalar_lea.vmem [#allocation2], %s3702_s8 }
  0x25   : > { %s64_s3 = sshll.u32 %s3706_s10, 4  ;;  %s68_s11 = sadd.s32 1, %s3702_s8  ;;  %s3710_s3 = int_to_ptr.vmem [resolvable:$true] %s64_s3 }
  0x26   : > { %s3712_s12 = sld [smem:[#allocation5 + %s68_s11]]  ;;  %s2326_s13 = scalar_lea.vmem %s3706_s10, 1 [#allocation2] }
  0x27   : > { %s84_s14 = sadd.s32 2, %s3702_s8  ;;  %s80_s15 = sshll.u32 %s2326_s13, 4  ;;  %s3718_s15 = int_to_ptr.vmem [resolvable:$true] %s80_s15 }
  0x28   : > { %s3716_s16 = sld [smem:[#allocation5 + %s84_s14]]  ;;  %s2331_s17 = scalar_lea.vmem %s3706_s10, 2 [#allocation2] }
  0x29   : > { %s96_s19 = sshll.u32 %s2331_s17, 4  ;;  %s3724_s19 = int_to_ptr.vmem [resolvable:$true] %s96_s19 }
  0x2a   : > { %s2427_s18 = sshll.u32 %s53_s9, 4 }
  0x2b   : > { %s55_s22 = scalar_lea.hbm %s5384_s2, %s2427_s18 }
  0x2c   : > { %s3414_s0 = scalar_lea.hbm %s55_s22, 16  ;;  %p3417_p0 = scmp.lt.u32.totalorder %s55_s22, %s5384_s2 }
  0x2d   : > { %p3415_p13 = scmp.ne.s32.totalorder %s55_s22, %s3414_s0  ;;  %p3418_p1 = scmp.lt.u32.totalorder %s3729_s25, %s3414_s0 }
  0x2e   : > { %p3420_p3 = scmp.lt.u32.totalorder %s3414_s0, %s55_s22 }
  0x2f   : > { %p3419_p2 = por %p3418_p1, %p3417_p0 }
  0x31   : > { %p3421_p4 = por %p3420_p3, %p3419_p2 }
  0x33   : > { %p3422_p5 = pnand %p3421_p4, %p3415_p13 }
  0x35   : > { %3425 = shalt.err (!%p3422_p5)  }
  0x36   : > { %s3426_s28 = scalar_lea.vmem %s3710_s3, 16  ;;  %s3648_s5 = smov [#allocation2]  }
  0x37   : > { %p3427_p6 = scmp.ne.s32.totalorder %s3710_s3, %s3426_s28  ;;  %s3428_s6 = sshll.u32 %s3648_s5, 4  ;;  %s3737_s6 = int_to_ptr.vmem [resolvable:$false] %s3428_s6 }
  0x38   : > { %s3740_s9 = scalar_lea.vmem %s3737_s6, 512  ;;  %p3431_p7 = scmp.lt.s32.totalorder %s3710_s3, %s3737_s6 }
  0x39   : > { %p3432_p8 = scmp.lt.s32.totalorder %s3740_s9, %s3426_s28 }
  0x3b   : > { %p3433_p9 = por %p3432_p8, %p3431_p7 }
  0x3d   : > { %p3434_p10 = pnand %p3433_p9, %p3427_p6 }
  0x3f   : > { %3437 = shalt.err (!%p3434_p10)  }
  0x40   : > { %67 = dma.hbm_to_vmem [thread:$0]  %s55_s22, 16, %s3710_s3, [#allocation3] }
  0x41   : > { %s2428_s11 = sshll.u32 %s3712_s12, 4  ;;  %s100_s13 = sadd.s32 3, %s3702_s8 }
  0x42   : > { %s71_s18 = scalar_lea.hbm %s5384_s2, %s2428_s11  ;;  %s2430_s20 = sshll.u32 %s3716_s16, 4 }
  0x43   : > { %s3438_s21 = scalar_lea.hbm %s71_s18, 16  ;;  %p3441_p12 = scmp.lt.u32.totalorder %s71_s18, %s5384_s2 }
  0x44   : > { %p3439_p11 = scmp.ne.s32.totalorder %s71_s18, %s3438_s21  ;;  %p3442_p13 = scmp.lt.u32.totalorder %s3729_s25, %s3438_s21 }
  0x45   : > { %p3444_p1 = scmp.lt.u32.totalorder %s3438_s21, %s71_s18 }
  0x46   : > { %p3443_p0 = por %p3442_p13, %p3441_p12 }
  0x48   : > { %p3445_p2 = por %p3444_p1, %p3443_p0 }
  0x4a   : > { %p3446_p3 = pnand %p3445_p2, %p3439_p11 }
  0x4c   : > { %3449 = shalt.err (!%p3446_p3)  }
  0x4d   : > { %s3450_s3 = scalar_lea.vmem %s3718_s15, 16  ;;  %p3455_p5 = scmp.lt.s32.totalorder %s3718_s15, %s3737_s6 }
  0x4e   : > { %p3451_p4 = scmp.ne.s32.totalorder %s3718_s15, %s3450_s3  ;;  %p3456_p6 = scmp.lt.s32.totalorder %s3740_s9, %s3450_s3 }
  0x50   : > { %p3457_p7 = por %p3456_p6, %p3455_p5 }
  0x52   : > { %p3458_p8 = pnand %p3457_p7, %p3451_p4 }
  0x54   : > { %3461 = shalt.err (!%p3458_p8)  }
  0x55   : > { %83 = dma.hbm_to_vmem [thread:$0]  %s71_s18, 16, %s3718_s15, [#allocation3] }
  0x56   : > { %s87_s22 = scalar_lea.hbm %s5384_s2, %s2430_s20  ;;  %s3765_s24 = sld [smem:[#allocation5 + %s100_s13]] }
  0x57   : > { %s3462_s26 = scalar_lea.hbm %s87_s22, 16  ;;  %p3465_p10 = scmp.lt.u32.totalorder %s87_s22, %s5384_s2 }
  0x58   : > { %p3463_p9 = scmp.ne.s32.totalorder %s87_s22, %s3462_s26  ;;  %p3466_p11 = scmp.lt.u32.totalorder %s3729_s25, %s3462_s26 }
  0x59   : > { %p3468_p13 = scmp.lt.u32.totalorder %s3462_s26, %s87_s22 }
  0x5a   : > { %p3467_p12 = por %p3466_p11, %p3465_p10 }
  0x5c   : > { %p3469_p0 = por %p3468_p13, %p3467_p12 }
  0x5e   : > { %p3470_p1 = pnand %p3469_p0, %p3463_p9 }
  0x60   : > { %3473 = shalt.err (!%p3470_p1)  }
  0x61   : > { %s3474_s15 = scalar_lea.vmem %s3724_s19, 16  ;;  %p3479_p3 = scmp.lt.s32.totalorder %s3724_s19, %s3737_s6 }
  0x62   : > { %p3475_p2 = scmp.ne.s32.totalorder %s3724_s19, %s3474_s15  ;;  %p3480_p4 = scmp.lt.s32.totalorder %s3740_s9, %s3474_s15 }
  0x64   : > { %p3481_p5 = por %p3480_p4, %p3479_p3 }
  0x66   : > { %p3482_p6 = pnand %p3481_p5, %p3475_p2 }
  0x68   : > { %3485 = shalt.err (!%p3482_p6)  }
  0x69   : > { %99 = dma.hbm_to_vmem [thread:$0]  %s87_s22, 16, %s3724_s19, [#allocation3] }
  0x6a   : > { %s2336_s5 = scalar_lea.vmem %s3706_s10, 3 [#allocation2]  ;;  %s116_s11 = sadd.s32 4, %s3702_s8 }
  0x6b   : > { %s112_s13 = sshll.u32 %s2336_s5, 4  ;;  %s3779_s14 = sld [smem:[#allocation5 + %s116_s11]]  ;;  %s113_s13 = int_to_ptr.vmem [resolvable:$true] %s112_s13 }
  0x6c   : > { %s2341_s17 = scalar_lea.vmem %s3706_s10, 4 [#allocation2]  ;;  %s132_s20 = sadd.s32 5, %s3702_s8 }
  0x6d   : > { %s128_s18 = sshll.u32 %s2341_s17, 4  ;;  %s2432_s21 = sshll.u32 %s3765_s24, 4  ;;  %s3784_s18 = int_to_ptr.vmem [resolvable:$true] %s128_s18 }
  0x6e   : > { %s103_s3 = scalar_lea.hbm %s5384_s2, %s2432_s21  ;;  %s3789_s12 = sld [smem:[#allocation5 + %s132_s20]] }
  0x6f   : > { %s3486_s19 = scalar_lea.hbm %s103_s3, 16  ;;  %p3489_p8 = scmp.lt.u32.totalorder %s103_s3, %s5384_s2 }
  0x70   : > { %p3487_p7 = scmp.ne.s32.totalorder %s103_s3, %s3486_s19  ;;  %p3490_p9 = scmp.lt.u32.totalorder %s3729_s25, %s3486_s19 }
  0x71   : > { %p3492_p11 = scmp.lt.u32.totalorder %s3486_s19, %s103_s3 }
  0x72   : > { %p3491_p10 = por %p3490_p9, %p3489_p8 }
  0x74   : > { %p3493_p12 = por %p3492_p11, %p3491_p10 }
  0x76   : > { %p3494_p13 = pnand %p3493_p12, %p3487_p7 }
  0x78   : > { %3497 = shalt.err (!%p3494_p13)  }
  0x79   : > { %s3498_s24 = scalar_lea.vmem %s113_s13, 16  ;;  %p3503_p1 = scmp.lt.s32.totalorder %s113_s13, %s3737_s6 }
  0x7a   : > { %p3499_p0 = scmp.ne.s32.totalorder %s113_s13, %s3498_s24  ;;  %p3504_p2 = scmp.lt.s32.totalorder %s3740_s9, %s3498_s24 }
  0x7c   : > { %p3505_p3 = por %p3504_p2, %p3503_p1 }
  0x7e   : > { %p3506_p4 = pnand %p3505_p3, %p3499_p0 }
  0x80   : > { %3509 = shalt.err (!%p3506_p4)  }
  0x81   : > { %115 = dma.hbm_to_vmem [thread:$0]  %s103_s3, 16, %s113_s13, [#allocation3] }
  0x82   : > { %s2434_s26 = sshll.u32 %s3779_s14, 4  ;;  %s2346_s27 = scalar_lea.vmem %s3706_s10, 5 [#allocation2] }
  0x83   : > { %s119_s5 = scalar_lea.hbm %s5384_s2, %s2434_s26  ;;  %s144_s11 = sshll.u32 %s2346_s27, 4  ;;  %s145_s11 = int_to_ptr.vmem [resolvable:$true] %s144_s11 }
  0x84   : > { %s3510_s17 = scalar_lea.hbm %s119_s5, 16  ;;  %p3513_p6 = scmp.lt.u32.totalorder %s119_s5, %s5384_s2 }
  0x85   : > { %p3511_p5 = scmp.ne.s32.totalorder %s119_s5, %s3510_s17  ;;  %p3514_p7 = scmp.lt.u32.totalorder %s3729_s25, %s3510_s17 }
  0x86   : > { %p3516_p9 = scmp.lt.u32.totalorder %s3510_s17, %s119_s5 }
  0x87   : > { %p3515_p8 = por %p3514_p7, %p3513_p6 }
  0x89   : > { %p3517_p10 = por %p3516_p9, %p3515_p8 }
  0x8b   : > { %p3518_p11 = pnand %p3517_p10, %p3511_p5 }
  0x8d   : > { %3521 = shalt.err (!%p3518_p11)  }
  0x8e   : > { %s3522_s13 = scalar_lea.vmem %s3784_s18, 16  ;;  %p3527_p13 = scmp.lt.s32.totalorder %s3784_s18, %s3737_s6 }
  0x8f   : > { %p3523_p12 = scmp.ne.s32.totalorder %s3784_s18, %s3522_s13  ;;  %p3528_p0 = scmp.lt.s32.totalorder %s3740_s9, %s3522_s13 }
  0x91   : > { %p3529_p1 = por %p3528_p0, %p3527_p13 }
  0x93   : > { %p3530_p2 = pnand %p3529_p1, %p3523_p12 }
  0x95   : > { %3533 = shalt.err (!%p3530_p2)  }
  0x96   : > { %131 = dma.hbm_to_vmem [thread:$0]  %s119_s5, 16, %s3784_s18, [#allocation3] }
  0x97   : > { %s148_s14 = sadd.s32 6, %s3702_s8  ;;  %s2436_s0 = sshll.u32 %s3789_s12, 4 }
  0x98   : > { %s149_s23 = sld [smem:[#allocation5 + %s148_s14]]  ;;  %s135_s16 = scalar_lea.hbm %s5384_s2, %s2436_s0 }
  0x99   : > { %s2351_s22 = scalar_lea.vmem %s3706_s10, 6 [#allocation2]  ;;  %s3534_s24 = scalar_lea.hbm %s135_s16, 16 }
  0x9a   : > { %p3535_p3 = scmp.ne.s32.totalorder %s135_s16, %s3534_s24  ;;  %p3537_p4 = scmp.lt.u32.totalorder %s135_s16, %s5384_s2 }
  0x9b   : > { %p3538_p5 = scmp.lt.u32.totalorder %s3729_s25, %s3534_s24  ;;  %p3540_p7 = scmp.lt.u32.totalorder %s3534_s24, %s135_s16 }
  0x9d   : > { %p3539_p6 = por %p3538_p5, %p3537_p4 }
  0x9f   : > { %p3541_p8 = por %p3540_p7, %p3539_p6 }
  0xa1   : > { %p3542_p9 = pnand %p3541_p8, %p3535_p3 }
  0xa3   : > { %3545 = shalt.err (!%p3542_p9)  }
  0xa4   : > { %s3546_s18 = scalar_lea.vmem %s145_s11, 16  ;;  %p3551_p11 = scmp.lt.s32.totalorder %s145_s11, %s3737_s6 }
  0xa5   : > { %p3547_p10 = scmp.ne.s32.totalorder %s145_s11, %s3546_s18  ;;  %p3552_p12 = scmp.lt.s32.totalorder %s3740_s9, %s3546_s18 }
  0xa7   : > { %p3553_p13 = por %p3552_p12, %p3551_p11 }
  0xa9   : > { %p3554_p0 = pnand %p3553_p13, %p3547_p10 }
  0xab   : > { %3557 = shalt.err (!%p3554_p0)  }
  0xac   : > { %147 = dma.hbm_to_vmem [thread:$0]  %s135_s16, 16, %s145_s11, [#allocation3] }
  0xad   : > { %s160_s12 = sshll.u32 %s2351_s22, 4  ;;  %s164_s28 = sadd.s32 7, %s3702_s8  ;;  %s161_s12 = int_to_ptr.vmem [resolvable:$true] %s160_s12 }
  0xae   : > { %s165_s15 = sld [smem:[#allocation5 + %s164_s28]]  ;;  %s2356_s5 = scalar_lea.vmem %s3706_s10, 7 [#allocation2] }
  0xaf   : > { %s2438_s17 = sshll.u32 %s149_s23, 4  ;;  %s176_s20 = sshll.u32 %s2356_s5, 4  ;;  %s177_s20 = int_to_ptr.vmem [resolvable:$true] %s176_s20 }
  0xb0   : > { %s151_s14 = scalar_lea.hbm %s5384_s2, %s2438_s17 }
  0xb1   : > { %s3558_s0 = scalar_lea.hbm %s151_s14, 16  ;;  %p3561_p2 = scmp.lt.u32.totalorder %s151_s14, %s5384_s2 }
  0xb2   : > { %p3559_p1 = scmp.ne.s32.totalorder %s151_s14, %s3558_s0  ;;  %p3562_p3 = scmp.lt.u32.totalorder %s3729_s25, %s3558_s0 }
  0xb3   : > { %p3564_p5 = scmp.lt.u32.totalorder %s3558_s0, %s151_s14 }
  0xb4   : > { %p3563_p4 = por %p3562_p3, %p3561_p2 }
  0xb6   : > { %p3565_p6 = por %p3564_p5, %p3563_p4 }
  0xb8   : > { %p3566_p7 = pnand %p3565_p6, %p3559_p1 }
  0xba   : > { %3569 = shalt.err (!%p3566_p7)  }
  0xbb   : > { %s3570_s8 = scalar_lea.vmem %s161_s12, 16  ;;  %p3575_p9 = scmp.lt.s32.totalorder %s161_s12, %s3737_s6 }
  0xbc   : > { %p3571_p8 = scmp.ne.s32.totalorder %s161_s12, %s3570_s8  ;;  %p3576_p10 = scmp.lt.s32.totalorder %s3740_s9, %s3570_s8 }
  0xbe   : > { %p3577_p11 = por %p3576_p10, %p3575_p9 }
  0xc0   : > { %p3578_p12 = pnand %p3577_p11, %p3571_p8 }
  0xc2   : > { %3581 = shalt.err (!%p3578_p12)  }
  0xc3   : > { %163 = dma.hbm_to_vmem [thread:$0]  %s151_s14, 16, %s161_s12, [#allocation3] }
  0xc4   : > { %s2440_s10 = sshll.u32 %s165_s15, 4 }
  0xc5   : > { %s167_s16 = scalar_lea.hbm %s5384_s2, %s2440_s10 }
  0xc6   : > { %s3582_s22 = scalar_lea.hbm %s167_s16, 16  ;;  %p3585_p0 = scmp.lt.u32.totalorder %s167_s16, %s5384_s2 }
  0xc7   : > { %p3583_p13 = scmp.ne.s32.totalorder %s167_s16, %s3582_s22  ;;  %p3586_p1 = scmp.lt.u32.totalorder %s3729_s25, %s3582_s22 }
  0xc8   : > { %p3588_p3 = scmp.lt.u32.totalorder %s3582_s22, %s167_s16 }
  0xc9   : > { %p3587_p2 = por %p3586_p1, %p3585_p0 }
  0xcb   : > { %p3589_p4 = por %p3588_p3, %p3587_p2 }
  0xcd   : > { %p3590_p5 = pnand %p3589_p4, %p3583_p13 }
  0xcf   : > { %3593 = shalt.err (!%p3590_p5)  }
  0xd0   : > { %s3594_s27 = scalar_lea.vmem %s177_s20, 16  ;;  %p3599_p7 = scmp.lt.s32.totalorder %s177_s20, %s3737_s6 }
  0xd1   : > { %p3595_p6 = scmp.ne.s32.totalorder %s177_s20, %s3594_s27  ;;  %p3600_p8 = scmp.lt.s32.totalorder %s3740_s9, %s3594_s27 }
  0xd3   : > { %p3601_p9 = por %p3600_p8, %p3599_p7 }
  0xd5   : > { %p3602_p10 = pnand %p3601_p9, %p3595_p6 }
  0xd7   : > { %3605 = shalt.err (!%p3602_p10)  }
  0xd8   : > { %179 = dma.hbm_to_vmem [thread:$0]  %s167_s16, 16, %s177_s20, [#allocation3] }
  0xd9   : > { %s51_s7 = sadd.s32 1, %s3642_s7  }
  0xda   : > { %p48_p11 = scmp.ge.s32.totalorder %s51_s7, 2  }
  0xdb   :  { %v339_v0 = vld [vmem:[%s5383_s1] sm:$0xff] (%p48_p11)  ;;  %v3649_v2 = vmov (%p48_p11), 0   ;;  %v3852_v3 = vld [vmem:[#allocation6 + $0x88] sm:$0xff] (%p48_p11)  ;;  %v3862_v10 = vld [vmem:[#allocation6 + $0x90] sm:$0xff] (%p48_p11) }
  0xdc   :  { %50 = sbr.rel (!%p48_p11) target bundleno = 35 (0x23), region = 154  ;;  %v3850_v1 = vld [vmem:[#allocation6 + $0x80] sm:$0xff] (%p48_p11)  ;;  %3379 = vset.pattern.permute.xlu0 (%p48_p11), %v3649_v2  ;;  %v3857_v6 = vld [vmem:[#allocation6 + $0x8] sm:$0xff] (%p48_p11)  ;;  %v492_v7 = vand.u32 (%p48_p11), 4294901760, %v3852_v3  ;;  %v3864_v11 = vld [vmem:[#allocation6 + $0x98] sm:$0xff] (%p48_p11)  ;;  %v495_v15 = vand.u32 (%p48_p11), 4294901760, %v3862_v10 }
  0xdd   :  { %v489_v4 = vand.u32 (%p48_p11), 4294901760, %v3850_v1  ;;  %v3855_v5 = vld [vmem:[#allocation6] sm:$0xff] (%p48_p11)  ;;  %342 = vperm.xlu0 (%p48_p11), %3379, %v339_v0   ;;  %v444_v9 = vand.u32 (%p48_p11), 4294901760, %v3857_v6  ;;  %v3866_v12 = vld [vmem:[#allocation6 + $0x10] sm:$0xff] (%p48_p11)  ;;  %v340_v13 = vld [vmem:[%s5383_s1 + $0x8] sm:$0xff] (%p48_p11)  ;;  %v498_v16 = vand.u32 (%p48_p11), 4294901760, %v3864_v11 }
  0xde   :  { %v441_v8 = vand.u32 (%p48_p11), 4294901760, %v3855_v5  ;;  %v3876_v17 = vld [vmem:[#allocation6 + $0x18] sm:$0xff] (%p48_p11)  ;;  %v447_v18 = vand.u32 (%p48_p11), 4294901760, %v3866_v12  ;;  %v3880_v19 = vsub.f32 (%p48_p11), %v3852_v3, %v492_v7  ;;  %v3895_v24 = vsub.f32 (%p48_p11), %v3862_v10, %v495_v15  ;;  %v3931_v39 = vld [vmem:[#allocation6 + $0xa0] sm:$0xff] (%p48_p11)  ;;  %v3942_v44 = vld [vmem:[#allocation6 + $0xa8] sm:$0xff] (%p48_p11) }
  0xdf   :  { %v3872_v14 = vsub.f32 (%p48_p11), %v3850_v1, %v489_v4  ;;  %v3888_v21 = vsub.f32 (%p48_p11), %v3857_v6, %v444_v9  ;;  %v450_v22 = vand.u32 (%p48_p11), 4294901760, %v3876_v17  ;;  %v3900_v25 = vsub.f32 (%p48_p11), %v3864_v11, %v498_v16  ;;  %v3947_v49 = vld [vmem:[#allocation6 + $0x20] sm:$0xff] (%p48_p11)  ;;  %v3950_v54 = vld [vmem:[#allocation6 + $0x28] sm:$0xff] (%p48_p11)  ;;  %v3953_v59 = vld [vmem:[#allocation6 + $0xb0] sm:$0xff] (%p48_p11) }
  0xe0   :  { %v3885_v20 = vsub.f32 (%p48_p11), %v3855_v5, %v441_v8  ;;  %v3905_v26 = vsub.f32 (%p48_p11), %v3866_v12, %v447_v18  ;;  %v5406_v27 = vand.u32 (%p48_p11), 4294901760, %v3880_v19  ;;  %v5400_v32 = vand.u32 (%p48_p11), 4294901760, %v3895_v24  ;;  %v3955_v60 = vld [vmem:[#allocation6 + $0xb8] sm:$0xff] (%p48_p11)  ;;  %v3965_v1 = vld [vmem:[#allocation6 + $0x30] sm:$0xff] (%p48_p11) }
  0xe1   :  { %v5407_v23 = vand.u32 (%p48_p11), 4294901760, %v3872_v14  ;;  %345 = vperm.xlu0 (%p48_p11), %3379, %v340_v13   ;;  %v5401_v29 = vand.u32 (%p48_p11), 4294901760, %v3888_v21  ;;  %v3913_v30 = vsub.f32 (%p48_p11), %v3876_v17, %v450_v22  ;;  %v5399_v33 = vand.u32 (%p48_p11), 4294901760, %v3900_v25 }
  0xe2   :  { %v5403_v28 = vand.u32 (%p48_p11), 4294901760, %v3885_v20  ;;  %v5398_v34 = vand.u32 (%p48_p11), 4294901760, %v3905_v26  ;;  %v690_v35 = vsub.f32 (%p48_p11), %v3880_v19, %v5406_v27  ;;  %v697_v41 = vsub.f32 (%p48_p11), %v3895_v24, %v5400_v32 }
  0xe3   :  { %v683_v31 = vsub.f32 %v3872_v14, %v5407_v23  ;;  %v578_v37 = vsub.f32 %v3888_v21, %v5401_v29  ;;  %v5392_v38 = vand.u32 4294901760, %v3913_v30  ;;  %v704_v42 = vsub.f32 %v3900_v25, %v5399_v33  ;;  %v4180_v23 = vld [vmem:[#allocation6 + $0x60] sm:$0xff] }
  0xe4   :  { %v571_v36 = vsub.f32 %v3885_v20, %v5403_v28  ;;  %v585_v43 = vsub.f32 %v3905_v26, %v5398_v34  ;;  %v691_v45 = vand.u32 4294901760, %v690_v35  ;;  %v698_v50 = vand.u32 4294901760, %v697_v41 }
  0xe5   :  { %v684_v40 = vand.u32 4294901760, %v683_v31  ;;  %v579_v47 = vand.u32 4294901760, %v578_v37  ;;  %v592_v48 = vsub.f32 %v3913_v30, %v5392_v38  ;;  %v705_v51 = vand.u32 4294901760, %v704_v42 }
  0xe6   :  { %v572_v46 = vand.u32 4294901760, %v571_v36  ;;  %v586_v52 = vand.u32 4294901760, %v585_v43  ;;  %v501_v53 = vand.u32 4294901760, %v3931_v39  ;;  %v504_v58 = vand.u32 4294901760, %v3942_v44  ;;  %v3986_v36 = vld [vmem:[#allocation6 + $0x38] sm:$0xff] }
  0xe7   :  { %v3011_v55 = vpack.c.bf16 %v691_v45, %v684_v40  ;;  %v593_v57 = vand.u32 4294901760, %v592_v48  ;;  %v3015_v61 = vpack.c.bf16 %v705_v51, %v698_v50  ;;  %v3962_v63 = vpack.c.bf16 %v492_v7, %v489_v4 }
  0xe8   :  { %v3013_v56 = vpack.c.bf16 %v579_v47, %v572_v46  ;;  %v3960_v62 = vsub.f32 %v3931_v39, %v501_v53  ;;  %v453_v0 = vand.u32 4294901760, %v3947_v49  ;;  %v3970_v3 = vsub.f32 %v3942_v44, %v504_v58 }
  0xe9   :  { %3012 = vmatprep.subr.bf16.mxu1 %v3011_v55  ;;  %v3017_v2 = vpack.c.bf16 %v593_v57, %v586_v52  ;;  %v456_v6 = vand.u32 4294901760, %v3950_v54  ;;  %v3975_v13 = vpack.c.bf16 %v444_v9, %v441_v8  ;;  %2980 = vmatprep.subr.bf16.mxu0 %v3962_v63  ;;  %v507_v31 = vand.u32 4294901760, %v3953_v59  ;;  %v4043_v57 = vld [vmem:[#allocation6 + $0xc8] sm:$0xff] }
  0xea   :  { %3014 = vmatpush3.bf16.msra.mxu1 %v3013_v56  ;;  %v5390_v4 = vand.u32 4294901760, %v3960_v62  ;;  %v3982_v7 = vsub.f32 %v3947_v49, %v453_v0  ;;  %v510_v35 = vand.u32 4294901760, %v3955_v60  ;;  %v5389_v5 = vand.u32 4294901760, %v3970_v3  ;;  %v4041_v56 = vld [vmem:[#allocation6 + $0xc0] sm:$0xff]  ;;  %v4111_v49 = vld [vmem:[#allocation6 + $0x58] sm:$0xff] }
  0xeb   :  { %3016 = vmatprep.subr.bf16.mxu1 %v3015_v61  ;;  %v3992_v8 = vsub.f32 %v3950_v54, %v456_v6  ;;  %2982 = vmatpush3.bf16.msra.mxu0 %v3975_v13  ;;  %v3999_v9 = vpack.c.bf16 %v498_v16, %v495_v15  ;;  %v459_v37 = vand.u32 4294901760, %v3965_v1  ;;  %v4009_v42 = vsub.f32 %v3953_v59, %v507_v31 }
  0xec   :  { %v711_v40 = vsub.f32 %v3960_v62, %v5390_v4  ;;  %v5388_v41 = vand.u32 4294901760, %v3982_v7  ;;  %v4014_v10 = vsub.f32 %v3955_v60, %v510_v35  ;;  %v718_v11 = vsub.f32 %v3970_v3, %v5389_v5  ;;  %v4061_v4 = vld [vmem:[#allocation6 + $0x40] sm:$0xff] }
  0xed   :  { %v5387_v15 = vand.u32 4294901760, %v3992_v8  ;;  %2984 = vmatprep.subr.bf16.mxu0 %v3999_v9  ;;  %v462_v16 = vand.u32 4294901760, %v3986_v36  ;;  %v4025_v43 = vsub.f32 %v3965_v1, %v459_v37  ;;  %v5391_v47 = vand.u32 4294901760, %v4009_v42 }
  0xee   :  { %3018 = vmatpush3.bf16.msra.mxu1 %v3017_v2  ;;  %v712_v45 = vand.u32 4294901760, %v711_v40  ;;  %v599_v46 = vsub.f32 %v3982_v7, %v5388_v41  ;;  %v5394_v48 = vand.u32 4294901760, %v4014_v10  ;;  %v719_v50 = vand.u32 4294901760, %v718_v11 }
  0xef   :  { %v606_v51 = vsub.f32 %v3992_v8, %v5387_v15  ;;  %v5393_v52 = vand.u32 4294901760, %v4025_v43  ;;  %v4039_v55 = vsub.f32 %v3986_v36, %v462_v16  ;;  %v725_v2 = vsub.f32 %v4009_v42, %v5391_v47 }
  0xf0   :  { %v600_v61 = vand.u32 4294901760, %v599_v46  ;;  %v732_v40 = vsub.f32 %v4014_v10, %v5394_v48  ;;  %v4055_v11 = vpack.c.bf16 %v450_v22, %v447_v18  ;;  %v3019_v15 = vpack.c.bf16 %v719_v50, %v712_v45  ;;  %v4066_v18 = vld [vmem:[#allocation6 + $0x48] sm:$0xff]  ;;  %v4068_v22 = vld [vmem:[#allocation6 + $0xd0] sm:$0xff] }
  0xf1   :  { %v607_v41 = vand.u32 4294901760, %v606_v51  ;;  %v613_v46 = vsub.f32 %v4025_v43, %v5393_v52  ;;  %v5395_v5 = vand.u32 4294901760, %v4039_v55  ;;  %v726_v47 = vand.u32 4294901760, %v725_v2 }
  0xf2   :  { %v733_v38 = vand.u32 4294901760, %v732_v40  ;;  %2986 = vmatpush3.bf16.msra.mxu0 %v4055_v11  ;;  %v513_v12 = vand.u32 4294901760, %v4041_v56  ;;  %v516_v17 = vand.u32 4294901760, %v4043_v57  ;;  %3020 = vmatprep.subr.bf16.mxu1 %v3019_v15  ;;  %v4077_v2 = vpack.c.bf16 %v504_v58, %v501_v53  ;;  %v4079_v40 = vld [vmem:[#allocation6 + $0xd8] sm:$0xff] }
  0xf3   :  { %v3021_v45 = vpack.c.bf16 %v607_v41, %v600_v61  ;;  %v614_v50 = vand.u32 4294901760, %v613_v46  ;;  %v620_v51 = vsub.f32 %v4039_v55, %v5395_v5  ;;  %v465_v15 = vand.u32 4294901760, %v4061_v4 }
  0xf4   :  { %v3023_v52 = vpack.c.bf16 %v733_v38, %v726_v47  ;;  %v4084_v48 = vsub.f32 %v4041_v56, %v513_v12  ;;  %v4089_v41 = vsub.f32 %v4043_v57, %v516_v17  ;;  %2988 = vmatprep.subr.bf16.mxu0 %v4077_v2  ;;  %v468_v44 = vand.u32 4294901760, %v4066_v18 }
  0xf5   :  { %3022 = vmatpush3.bf16.msra.mxu1 %v3021_v45  ;;  %v621_v39 = vand.u32 4294901760, %v620_v51  ;;  %v4098_v38 = vpack.c.bf16 %v456_v6, %v453_v0  ;;  %v5411_v53 = vand.u32 4294901760, %v4068_v22  ;;  %v4106_v61 = vsub.f32 %v4061_v4, %v465_v15  ;;  %v4109_v45 = vld [vmem:[#allocation6 + $0x50] sm:$0xff] }
  0xf6   :  { %3024 = vmatprep.subr.bf16.mxu1 %v3023_v52  ;;  %v5396_v58 = vand.u32 4294901760, %v4084_v48  ;;  %v5397_v47 = vand.u32 4294901760, %v4089_v41  ;;  %v5410_v46 = vand.u32 4294901760, %v4079_v40  ;;  %v4116_v0 = vsub.f32 %v4066_v18, %v468_v44 }
  0xf7   :  { %v3025_v54 = vpack.c.bf16 %v621_v39, %v614_v50  ;;  %2990 = vmatpush3.bf16.msra.mxu0 %v4098_v38  ;;  %v4122_v6 = vsub.f32 %v4068_v22, %v5411_v53  ;;  %v4128_v52 = vpack.c.bf16 %v510_v35, %v507_v31  ;;  %v5402_v39 = vand.u32 4294901760, %v4106_v61 }
  0xf8   :  { %v739_v50 = vsub.f32 %v4084_v48, %v5396_v58  ;;  %v746_v51 = vsub.f32 %v4089_v41, %v5397_v47  ;;  %v4140_v5 = vsub.f32 %v4079_v40, %v5410_v46  ;;  %v5404_v59 = vand.u32 4294901760, %v4116_v0 }
  0xf9   :  { %3026 = vmatpush3.bf16.msra.mxu1 %v3025_v54  ;;  %v5405_v60 = vand.u32 4294901760, %v4122_v6  ;;  %2992 = vmatprep.subr.bf16.mxu0 %v4128_v52  ;;  %v5409_v31 = vand.u32 4294901760, %v4109_v45  ;;  %v5408_v35 = vand.u32 4294901760, %v4111_v49  ;;  %v627_v34 = vsub.f32 %v4106_v61, %v5402_v39  ;;  %v4169_v39 = vld [vmem:[#allocation6 + $0xe8] sm:$0xff] }
  0xfa   :  { %v740_v58 = vand.u32 4294901760, %v739_v50  ;;  %v747_v47 = vand.u32 4294901760, %v746_v51  ;;  %v5412_v33 = vand.u32 4294901760, %v4140_v5  ;;  %v634_v54 = vsub.f32 %v4116_v0, %v5404_v59  ;;  %v4167_v51 = vld [vmem:[#allocation6 + $0xe0] sm:$0xff] }
  0xfb   :  { %v753_v32 = vsub.f32 %v4122_v6, %v5405_v60  ;;  %v4160_v29 = vsub.f32 %v4109_v45, %v5409_v31  ;;  %v4165_v50 = vsub.f32 %v4111_v49, %v5408_v35  ;;  %v628_v59 = vand.u32 4294901760, %v627_v34 }
  0xfc   :  { %v3027_v28 = vpack.c.bf16 %v747_v47, %v740_v58  ;;  %v760_v60 = vsub.f32 %v4140_v5, %v5412_v33  ;;  %v4178_v27 = vpack.c.bf16 %v462_v16, %v459_v37  ;;  %v635_v35 = vand.u32 4294901760, %v634_v54  ;;  %v4184_v58 = vld [vmem:[#allocation6 + $0x68] sm:$0xff] }
  0xfd   :  { %v754_v31 = vand.u32 4294901760, %v753_v32  ;;  %v5415_v46 = vand.u32 4294901760, %v4160_v29  ;;  %v5413_v53 = vand.u32 4294901760, %v4165_v50  ;;  %v525_v1 = vand.u32 4294901760, %v4167_v51 }
  0xfe   :  { %5523 = vst [vmem:[#allocation48_spill] sm:$0xff] %v4178_v27  ;;  %3028 = vmatprep.subr.bf16.mxu1 %v3027_v28  ;;  %v761_v34 = vand.u32 4294901760, %v760_v60  ;;  %2994 = vmatpush3.bf16.msra.mxu0 %v4178_v27  ;;  %v528_v36 = vand.u32 4294901760, %v4169_v39  ;;  %v4193_v37 = vpack.c.bf16 %v516_v17, %v513_v12  ;;  %v3029_v32 = vpack.c.bf16 %v635_v35, %v628_v59  ;;  %v406_v60 = vld [vmem:[#allocation6 + $0xf0] sm:$0xff]  ;;  %v407_v12 = vld [vmem:[#allocation6 + $0xf8] sm:$0xff] }
  0xff   :  { %v641_v16 = vsub.f32 %v4160_v29, %v5415_v46  ;;  %v648_v28 = vsub.f32 %v4165_v50, %v5413_v53  ;;  %v477_v47 = vand.u32 4294901760, %v4180_v23  ;;  %v4203_v33 = vsub.f32 %v4167_v51, %v525_v1 }
 0x100   :  { %5524 = vst [vmem:[#allocation49_spill] sm:$0xff] %v4193_v37  ;;  %v3031_v54 = vpack.c.bf16 %v761_v34, %v754_v31  ;;  %v4206_v56 = vsub.f32 %v4169_v39, %v528_v36  ;;  %2996 = vmatprep.subr.bf16.mxu0 %v4193_v37  ;;  %v480_v57 = vand.u32 4294901760, %v4184_v58  ;;  %3030 = vmatpush3.bf16.msra.mxu1 %v3029_v32  ;;  %v531_v32 = vand.u32 4294901760, %v406_v60 }
 0x101   :  { %v642_v17 = vand.u32 4294901760, %v641_v16  ;;  %v649_v59 = vand.u32 4294901760, %v648_v28  ;;  %v4211_v35 = vsub.f32 %v4180_v23, %v477_v47  ;;  %v4217_v31 = vpack.c.bf16 %v468_v44, %v465_v15  ;;  %v390_v16 = vld [vmem:[#allocation6 + $0x70] sm:$0xff]  ;;  %v391_v28 = vld [vmem:[#allocation6 + $0x78] sm:$0xff] }
 0x102   :  { %3032 = vmatprep.subr.bf16.mxu1 %v3031_v54  ;;  %v5414_v39 = vand.u32 4294901760, %v4203_v33  ;;  %v5416_v51 = vand.u32 4294901760, %v4206_v56  ;;  %v4222_v34 = vsub.f32 %v4184_v58, %v480_v57  ;;  %v534_v4 = vand.u32 4294901760, %v407_v12 }
 0x103   :  { %5525 = vst [vmem:[#allocation50_spill] sm:$0xff] %v4217_v31  ;;  %v3033_v53 = vpack.c.bf16 %v649_v59, %v642_v17  ;;  %v5421_v23 = vand.u32 4294901760, %v4211_v35  ;;  %2998 = vmatpush3.bf16.msra.mxu0 %v4217_v31  ;;  %v5526_v18 = vand.u32 4294901760, %v4068_v22  ;;  %v5527_v15 = vand.u32 4294901760, %v4079_v40 }
 0x104   :  { %v767_v58 = vsub.f32 %v4203_v33, %v5414_v39  ;;  %v774_v54 = vsub.f32 %v4206_v56, %v5416_v51  ;;  %v5426_v17 = vand.u32 4294901760, %v4222_v34  ;;  %v4239_v59 = vsub.f32 %v406_v60, %v531_v32 }
 0x105   :  { %v4230_v44 = vpack.c.bf16 %v5527_v15, %v5526_v18  ;;  %3034 = vmatpush3.bf16.msra.mxu1 %v3033_v53  ;;  %v655_v22 = vsub.f32 %v4211_v35, %v5421_v23  ;;  %v4244_v40 = vsub.f32 %v407_v12, %v534_v4  ;;  %v483_v18 = vand.u32 4294901760, %v390_v16 }
 0x106   :  { %v486_v15 = vand.u32 4294901760, %v391_v28  ;;  %v768_v39 = vand.u32 4294901760, %v767_v58  ;;  %v775_v46 = vand.u32 4294901760, %v774_v54  ;;  %v662_v51 = vsub.f32 %v4222_v34, %v5426_v17 }
 0x107   :  { %5528 = vst [vmem:[#allocation51_spill] sm:$0xff] %v4230_v44  ;;  %3000 = vmatprep.subr.bf16.mxu0 %v4230_v44  ;;  %v5428_v60 = vand.u32 4294901760, %v4239_v59  ;;  %v656_v31 = vand.u32 4294901760, %v655_v22  ;;  %v5427_v53 = vand.u32 4294901760, %v4244_v40  ;;  %v4252_v37 = vsub.f32 %v390_v16, %v483_v18 }
 0x108   :  { %v4254_v23 = vsub.f32 %v391_v28, %v486_v15  ;;  %v3035_v12 = vpack.c.bf16 %v775_v46, %v768_v39  ;;  %v663_v27 = vand.u32 4294901760, %v662_v51  ;;  %v5529_v54 = vand.u32 4294901760, %v4109_v45 }
 0x109   :  { %v781_v58 = vsub.f32 %v4239_v59, %v5428_v60  ;;  %v5530_v44 = vand.u32 4294901760, %v4111_v49  ;;  %v788_v22 = vsub.f32 %v4244_v40, %v5427_v53  ;;  %v668_v16 = vand.u32 4294901760, %v4252_v37 }
 0x10a   :  { %v675_v28 = vand.u32 4294901760, %v4254_v23  ;;  %3036 = vmatprep.subr.bf16.mxu1 %v3035_v12  ;;  %v3037_v46 = vpack.c.bf16 %v663_v27, %v656_v31  ;;  %v4271_v51 = vpack.c.bf16 %v528_v36, %v525_v1  ;;  %v4278_v53 = vpack.c.bf16 %v534_v4, %v531_v32 }
 0x10b   :  { %v4263_v17 = vpack.c.bf16 %v5530_v44, %v5529_v54  ;;  %v782_v39 = vand.u32 4294901760, %v781_v58  ;;  %v789_v45 = vand.u32 4294901760, %v788_v22  ;;  %v669_v49 = vsub.f32 %v4252_v37, %v668_v16 }
 0x10c   :  { %v676_v44 = vsub.f32 %v4254_v23, %v675_v28  ;;  %3038 = vmatpush3.bf16.msra.mxu1 %v3037_v46  ;;  %v4276_v54 = vpack.c.bf16 %v480_v57, %v477_v47  ;;  %v4280_v60 = vpack.c.bf16 %v486_v15, %v483_v18  ;;  %v3043_v1 = vpack.c.bf16 %v3880_v19, %v3872_v14 }
 0x10d   :  { %3002 = vmatpush3.bf16.msra.mxu0 %v4263_v17  ;;  %v3039_v27 = vpack.c.bf16 %v789_v45, %v782_v39  ;;  %v670_v31 = vand.u32 4294901760, %v669_v49  ;;  %v5533_v49 = vand.u32 4294901760, %v3885_v20  ;;  %v5536_v46 = vand.u32 4294901760, %v3900_v25 }
 0x10e   :  { %3004 = vmatprep.subr.bf16.mxu0 %v4271_v51  ;;  %v677_v12 = vand.u32 4294901760, %v676_v44  ;;  %v5534_v44 = vand.u32 4294901760, %v3888_v21 }
 0x10f   :  { %3040 = vmatprep.subr.bf16.mxu1 %v3039_v27  ;;  %v5535_v27 = vand.u32 4294901760, %v3895_v24 }
 0x110   :  { %v3041_v32 = vpack.c.bf16 %v677_v12, %v670_v31  ;;  %v5531_v12 = vand.u32 4294901760, %v3872_v14  ;;  %v4328_v39 = vpack.c.bf16 %v5534_v44, %v5533_v49  ;;  %v5537_v31 = vand.u32 4294901760, %v3905_v26 }
 0x111   :  { %3006 = vmatpush3.bf16.msra.mxu0 %v4276_v54  ;;  %v4334_v22 = vpack.c.bf16 %v5536_v46, %v5535_v27  ;;  %v5538_v14 = vand.u32 4294901760, %v3913_v30  ;;  %v5542_v49 = vand.u32 4294901760, %v3992_v8  ;;  %v5544_v46 = vand.u32 4294901760, %v4009_v42 }
 0x112   :  { %3008 = vmatprep.subr.bf16.mxu0 %v4278_v53  ;;  %3042 = vmatpush3.bf16.msra.mxu1 %v3041_v32  ;;  %v5532_v32 = vand.u32 4294901760, %v3880_v19  ;;  %v5545_v27 = vand.u32 4294901760, %v4014_v10 }
 0x113   :  { %3076 = vmatprep.subr.bf16.mxu1 %v3962_v63  ;;  %v4340_v19 = vpack.c.bf16 %v5538_v14, %v5537_v31  ;;  %v5547_v31 = vand.u32 4294901760, %v4025_v43  ;;  %v5548_v14 = vand.u32 4294901760, %v4039_v55 }
 0x114   :  { %v4322_v45 = vpack.c.bf16 %v5532_v32, %v5531_v12  ;;  %v5539_v12 = vand.u32 4294901760, %v3960_v62  ;;  %v5540_v32 = vand.u32 4294901760, %v3970_v3  ;;  %v4358_v18 = vpack.c.bf16 %v5545_v27, %v5544_v46 }
 0x115   :  { %3010 = vmatpush3.bf16.msra.mxu0 %v4280_v60  ;;  %v4364_v4 = vpack.c.bf16 %v5548_v14, %v5547_v31  ;;  %v5556_v46 = vand.u32 4294901760, %v4122_v6  ;;  %v5557_v27 = vand.u32 4294901760, %v4140_v5  ;;  %v5559_v31 = vand.u32 4294901760, %v4160_v29 }
 0x116   :  { %3044 = vmatprep.subr.bf16.mxu0 %v3043_v1  ;;  %v4346_v15 = vpack.c.bf16 %v5540_v32, %v5539_v12  ;;  %v5541_v1 = vand.u32 4294901760, %v3982_v7  ;;  %5546 = vst [vmem:[#allocation53_spill] sm:$0xff] %v4358_v18  ;;  %v5550_v12 = vand.u32 4294901760, %v4084_v48  ;;  %v5551_v32 = vand.u32 4294901760, %v4089_v41 }
 0x117   :  { %5549 = vst [vmem:[#allocation54_spill] sm:$0xff] %v4364_v4  ;;  %v4382_v58 = vpack.c.bf16 %v5557_v27, %v5556_v46  ;;  %v5560_v14 = vand.u32 4294901760, %v4165_v50  ;;  %v5568_v46 = vand.u32 4294901760, %v4239_v59  ;;  %v5569_v27 = vand.u32 4294901760, %v4244_v40 }
 0x118   :  { %v4352_v44 = vpack.c.bf16 %v5542_v49, %v5541_v1  ;;  %v4370_v57 = vpack.c.bf16 %v5551_v32, %v5550_v12  ;;  %v5553_v1 = vand.u32 4294901760, %v4106_v61  ;;  %v5554_v49 = vand.u32 4294901760, %v4116_v0 }
 0x119   :  { %5558 = vst [vmem:[#allocation57_spill] sm:$0xff] %v4382_v58  ;;  %v4388_v36 = vpack.c.bf16 %v5560_v14, %v5559_v31  ;;  %v5562_v12 = vand.u32 4294901760, %v4203_v33  ;;  %v5563_v32 = vand.u32 4294901760, %v4206_v56  ;;  %v4406_v58 = vpack.c.bf16 %v5569_v27, %v5568_v46 }
 0x11a   :  { %5543 = vst [vmem:[#allocation52_spill] sm:$0xff] %v4352_v44  ;;  %5552 = vst [vmem:[#allocation55_spill] sm:$0xff] %v4370_v57  ;;  %v4376_v47 = vpack.c.bf16 %v5554_v49, %v5553_v1  ;;  %v5565_v1 = vand.u32 4294901760, %v4211_v35  ;;  %v5566_v49 = vand.u32 4294901760, %v4222_v34  ;;  %v4408_v31 = vpack.c.bf16 %v675_v28, %v668_v16 }
 0x11b   :  { %5561 = vst [vmem:[#allocation58_spill] sm:$0xff] %v4388_v36  ;;  %v4394_v57 = vpack.c.bf16 %v5563_v32, %v5562_v12  ;;  %5570 = vst [vmem:[#allocation61_spill] sm:$0xff] %v4406_v58  ;;  %v347_v14 = vlaneseq  ;;  %v5429_v28 = vmov 1.0  }
 0x11c   :  { %5555 = vst [vmem:[#allocation56_spill] sm:$0xff] %v4376_v47  ;;  %v4400_v47 = vpack.c.bf16 %v5566_v49, %v5565_v1  ;;  %5571 = vst [vmem:[#allocation62_spill] sm:$0xff] %v4408_v31  ;;  %v5431_v1 = vmov 0.0   ;;  %v5573_v31 = vmov 1.0  }
 0x11d   :  { %5564 = vst [vmem:[#allocation59_spill] sm:$0xff] %v4394_v57  ;;  %v4410_v36 = vand.u32 127, %v347_v14 }
 0x11e   :  { %5567 = vst [vmem:[#allocation60_spill] sm:$0xff] %v4400_v47 }
 0x11f   :  { %v4413_v12 = vadd.s32 128, %v4410_v36 }
 0x15c   :  { %v4415_v32 = vpop.permute.xlu0 %342 }
 0x15d   :  { %vm353_vm0 = vcmp.eq.s32.totalorder %v4415_v32, %v4413_v12  ;;  %vm352_vm1 = vcmp.eq.s32.totalorder %v4415_v32, %v4410_v36 }
 0x15e   :  { %v2467_v16 = vsel %vm353_vm0, 1.0, %v5431_v1  ;;  %2474 = vmatprep.mubr.msk.f32.mxu1 %vm353_vm0, %v5429_v28  ;;  %v2466_v49 = vsel %vm352_vm1, 1.0, %v5431_v1 }
 0x15f   :  { %v537_v46 = vsub.f32 %v2467_v16, %v2467_v16  ;;  %v4433_v27 = vsub.f32 %v2466_v49, %v2466_v49  ;;  %2475 = vmatmul.mubr.msk.f32.vlgmr.msra.gmra.mrb[0].mxu1 %vm352_vm1, %v5429_v28 }
 0x160   :  { %3078 = vmatpush3.bf16.msra.mxu1 %v3975_v13  ;;  %v4440_v14 = vpop.permute.xlu0 %345 }
 0x161   :  { %5572 = vst [vmem:[#allocation63_spill] sm:$0xff] %v4440_v14  ;;  %vm357_vm2 = vcmp.eq.s32.totalorder %v4440_v14, %v4413_v12  ;;  %3080 = vmatprep.subr.bf16.mxu1 %v3999_v9  ;;  %vm356_vm3 = vcmp.eq.s32.totalorder %v4440_v14, %v4410_v36  ;;  %v538_v16 = vand.u32 4294901760, %v537_v46  ;;  %v5574_v4 = vand.u32 4294901760, %v4433_v27 }
 0x162   :  { %v2471_v28 = vsel %vm357_vm2, 1.0, %v5431_v1  ;;  %2476 = vmatprep.mubr.msk.f32.mxu1 %vm357_vm2, %v5573_v31  ;;  %v2470_v58 = vsel %vm356_vm3, 1.0, %v5431_v1 }
 0x163   :  { %v4460_v47 = vsub.f32 %v2471_v28, %v2471_v28  ;;  %v4462_v57 = vsub.f32 %v2470_v58, %v2470_v58  ;;  %2477 = vmatmul.mubr.msk.f32.gmra.mrb[2].mxu1 %vm356_vm3, %v5573_v31  ;;  %v539_v49 = vsub.f32 %v537_v46, %v538_v16  ;;  %v545_v18 = vsub.f32 %v4433_v27, %v5574_v4 }
 0x164   :  { %3082 = vmatpush3.bf16.msra.mxu1 %v4055_v11  ;;  %1052 = vmatprep.mubr.f32.mxu1 %v538_v16  ;;  %v5575_v16 = vpack.c.bf16 %v3888_v21, %v3885_v20  ;;  %v5580_v20 = vpack.c.bf16 %v3970_v3, %v3960_v62  ;;  %v5581_v21 = vld [vmem:[#allocation50_spill] sm:$0xff]  ;;  %v5587_v62 = vpack.c.bf16 %v4089_v41, %v4084_v48  ;;  %v4515_v3 = vld [vmem:[#allocation6 + $0x1f8] sm:$0xff]  ;;  %v4529_v48 = vld [vmem:[#allocation6 + $0x188] sm:$0xff] }
 0x165   :  { %3084 = vmatprep.subr.bf16.mxu1 %v4077_v2  ;;  %v540_v1 = vand.u32 4294901760, %v539_v49  ;;  %v546_v28 = vand.u32 4294901760, %v545_v18  ;;  %v5435_v58 = vand.u32 4294901760, %v4460_v47  ;;  %v5436_v44 = vand.u32 4294901760, %v4462_v57 }
 0x166   :  { %v5439_v41 = vand.u32 4294901760, %v4515_v3 }
 0x167   :  { %541 = vmatprep.mubr.f32.mxu0 %v540_v1  ;;  %v554_v14 = vsub.f32 %v4460_v47, %v5435_v58  ;;  %v560_v4 = vsub.f32 %v4462_v57, %v5436_v44  ;;  %v5576_v1 = vpack.c.bf16 %v3900_v25, %v3895_v24  ;;  %v5577_v58 = vld [vmem:[#allocation48_spill] sm:$0xff]  ;;  %v5578_v44 = vpack.c.bf16 %v3913_v30, %v3905_v26  ;;  %v5583_v25 = vld [vmem:[#allocation51_spill] sm:$0xff] }
 0x168   :  { %3086 = vmatpush3.bf16.msra.mxu1 %v4098_v38  ;;  %547 = vmatmul.mubr.f32.vlgmr.msra.gmra.mrb[0].mxu0 %v546_v28  ;;  %v5579_v28 = vld [vmem:[#allocation49_spill] sm:$0xff]  ;;  %v5582_v24 = vpack.c.bf16 %v3992_v8, %v3982_v7  ;;  %v5585_v26 = vpack.c.bf16 %v4039_v55, %v4025_v43  ;;  %v4510_v30 = vld [vmem:[#allocation6 + $0x1f0] sm:$0xff]  ;;  %v4527_v43 = vld [vmem:[#allocation6 + $0x180] sm:$0xff] }
 0x169   :  { %3046 = vmatpush3.bf16.msra.mxu0 %v5575_v16  ;;  %3088 = vmatprep.subr.bf16.mxu1 %v4128_v52  ;;  %v555_v18 = vand.u32 4294901760, %v554_v14  ;;  %v561_v49 = vand.u32 4294901760, %v560_v4  ;;  %v5584_v14 = vpack.c.bf16 %v4014_v10, %v4009_v42  ;;  %5586 = vst [vmem:[#allocation48_spill] sm:$0xff] %v4510_v30  ;;  %5588 = vst [vmem:[#allocation49_spill] sm:$0xff] %v4515_v3  ;;  %v4517_v7 = vld [vmem:[#allocation6 + $0x170] sm:$0xff]  ;;  %v4519_v8 = vld [vmem:[#allocation6 + $0x178] sm:$0xff] }
 0x16a   :  { %3048 = vmatprep.subr.bf16.mxu0 %v5576_v1  ;;  %5589 = vst [vmem:[#allocation50_spill] sm:$0xff] %v4517_v7  ;;  %5590 = vst [vmem:[#allocation51_spill] sm:$0xff] %v4519_v8  ;;  %v5440_v42 = vand.u32 4294901760, %v4510_v30  ;;  %v5591_v10 = vpack.c.bf16 %v4116_v0, %v4106_v61  ;;  %v4531_v55 = vld [vmem:[#allocation6 + $0x100] sm:$0xff]  ;;  %v5592_v4 = vpack.c.bf16 %v4140_v5, %v4122_v6  ;;  %v4539_v61 = vld [vmem:[#allocation6 + $0x108] sm:$0xff] }
 0x16b   :  { %556 = vmatprep.mubr.f32.mxu0 %v555_v18  ;;  %v4541_v0 = vld [vmem:[#allocation6 + $0x190] sm:$0xff]  ;;  %v4543_v16 = vld [vmem:[#allocation6 + $0x198] sm:$0xff]  ;;  %v5452_v18 = vand.u32 4294901760, %v4527_v43  ;;  %v5442_v1 = vand.u32 4294901760, %v4531_v55  ;;  %v5593_v6 = vpack.c.bf16 %v4165_v50, %v4160_v29  ;;  %v5594_v29 = vpack.c.bf16 %v4206_v56, %v4203_v33 }
 0x16c   :  { %3090 = vmatpush3.bf16.msra.mxu1 %v5577_v58  ;;  %562 = vmatmul.mubr.f32.gmra.mrb[2].mxu0 %v561_v49  ;;  %v5441_v49 = vand.u32 4294901760, %v4529_v48  ;;  %v4556_v5 = vsub.f32 %v4510_v30, %v5440_v42  ;;  %v5450_v50 = vand.u32 4294901760, %v4541_v0 }
 0x16d   :  { %3050 = vmatpush3.bf16.msra.mxu0 %v5578_v44  ;;  %936 = vmatprep.mubr.f32.mxu0 %v537_v46  ;;  %v5437_v44 = vand.u32 4294901760, %v4517_v7  ;;  %v5438_v46 = vand.u32 4294901760, %v4519_v8  ;;  %v4593_v33 = vsub.f32 %v4527_v43, %v5452_v18 }
 0x16e   :  { %3092 = vmatprep.subr.bf16.mxu1 %v5579_v28  ;;  %3052 = vmatprep.subr.bf16.mxu0 %v5580_v20  ;;  %v4549_v20 = vld [vmem:[#allocation6 + $0x110] sm:$0xff]  ;;  %v4598_v56 = vsub.f32 %v4529_v48, %v5441_v49  ;;  %v5601_v49 = vpack.c.bf16 %v4244_v40, %v4239_v59 }
 0x16f   :  { %5597 = vst [vmem:[#allocation64_spill] sm:$0xff] %v4593_v33 }
 0x170   :  { %3094 = vmatpush3.bf16.msra.mxu1 %v5581_v21  ;;  %5598 = vst [vmem:[#allocation65_spill] sm:$0xff] %v4598_v56 }
 0x171   :  { %3054 = vmatpush3.bf16.msra.mxu0 %v5582_v24  ;;  %3096 = vmatprep.subr.bf16.mxu1 %v5583_v25  ;;  %v4551_v24 = vld [vmem:[#allocation6 + $0x118] sm:$0xff] }
 0x172   :  { %3056 = vmatprep.subr.bf16.mxu0 %v5584_v14  ;;  %v4565_v14 = vsub.f32 %v4515_v3, %v5439_v41 }
 0x174   :  { %3098 = vmatpush3.bf16.msra.mxu1 %v4263_v17 }
 0x175   :  { %3058 = vmatpush3.bf16.msra.mxu0 %v5585_v26  ;;  %3100 = vmatprep.subr.bf16.mxu1 %v4271_v51  ;;  %v4570_v26 = vsub.f32 %v4517_v7, %v5437_v44  ;;  %v5443_v44 = vand.u32 4294901760, %v4551_v24 }
 0x176   :  { %3060 = vmatprep.subr.bf16.mxu0 %v5587_v62  ;;  %v4575_v62 = vsub.f32 %v4519_v8, %v5438_v46  ;;  %v5596_v46 = vand.u32 4294901760, %v4460_v47  ;;  %v4916_v8 = vld [vmem:[#allocation6 + $0x168] sm:$0xff] }
 0x177   :  { %v5446_v41 = vand.u32 4294901760, %v4570_v26  ;;  %v4641_v40 = vsub.f32 %v4551_v24, %v5443_v44  ;;  %v4662_v44 = vld [vmem:[#allocation6 + $0x1a8] sm:$0xff]  ;;  %5654 = vst [vmem:[#allocation83_spill] sm:$0xff] %v4916_v8 }
 0x178   :  { %3102 = vmatpush3.bf16.msra.mxu1 %v4276_v54  ;;  %v5445_v42 = vand.u32 4294901760, %v4575_v62 }
 0x179   :  { %3062 = vmatpush3.bf16.msra.mxu0 %v5591_v10  ;;  %3104 = vmatprep.subr.bf16.mxu1 %v4278_v53  ;;  %v5449_v10 = vand.u32 4294901760, %v4543_v16  ;;  %5607 = vst [vmem:[#allocation71_spill] sm:$0xff] %v4641_v40 }
 0x17a   :  { %3064 = vmatprep.subr.bf16.mxu0 %v5592_v4  ;;  %v5595_v4 = vand.u32 4294901760, %v4433_v27 }
 0x17c   :  { %3106 = vmatpush3.bf16.msra.mxu1 %v4280_v60 }
 0x17d   :  { %3066 = vmatpush3.bf16.msra.mxu0 %v5593_v6  ;;  %3140 = vmatprep.subr.bf16.mxu1 %v3962_v63  ;;  %v5451_v63 = vand.u32 4294901760, %v4539_v61  ;;  %v5448_v6 = vand.u32 4294901760, %v4549_v20 }
 0x17e   :  { %3068 = vmatprep.subr.bf16.mxu0 %v5594_v29  ;;  %v4603_v29 = vsub.f32 %v4531_v55, %v5442_v1 }
 0x17f   :  { %1056 = vmatmul.mubr.f32.vlgmr.msra.gmra.mrb[4].mxu1 %v5595_v4  ;;  %v5444_v4 = vand.u32 4294901760, %v4565_v14  ;;  %v4619_v1 = vsub.f32 %v4539_v61, %v5451_v63  ;;  %v4636_v59 = vsub.f32 %v4549_v20, %v5448_v6  ;;  %v4673_v6 = vld [vmem:[#allocation6 + $0x128] sm:$0xff] }
 0x180   :  { %1063 = vmatprep.mubr.f32.mxu1 %v5596_v46  ;;  %3142 = vmatpush3.bf16.msra.mxu1 %v3975_v13  ;;  %5599 = vst [vmem:[#allocation66_spill] sm:$0xff] %v4603_v29  ;;  %v5600_v46 = vpack.c.bf16 %v4222_v34, %v4211_v35  ;;  %v5447_v13 = vand.u32 4294901760, %v4556_v5  ;;  %v4629_v35 = vsub.f32 %v4543_v16, %v5449_v10  ;;  %v5605_v34 = vand.u32 4294901760, %v4462_v57 }
 0x181   :  { %3144 = vmatprep.subr.bf16.mxu1 %v3999_v9  ;;  %5602 = vst [vmem:[#allocation67_spill] sm:$0xff] %v4619_v1  ;;  %v4624_v9 = vsub.f32 %v4541_v0, %v5450_v50  ;;  %5606 = vst [vmem:[#allocation70_spill] sm:$0xff] %v4636_v59  ;;  %v5456_v10 = vand.u32 4294901760, %v4619_v1  ;;  %v5460_v50 = vand.u32 4294901760, %v4673_v6 }
 0x182   :  { %3070 = vmatpush3.bf16.msra.mxu0 %v5600_v46  ;;  %5604 = vst [vmem:[#allocation69_spill] sm:$0xff] %v4629_v35  ;;  %v4653_v46 = vpack.c.bf16 %v5445_v42, %v5446_v41  ;;  %v5453_v42 = vand.u32 4294901760, %v4593_v33  ;;  %v5454_v41 = vand.u32 4294901760, %v4598_v56 }
 0x183   :  { %3072 = vmatprep.subr.bf16.mxu0 %v5601_v49  ;;  %5603 = vst [vmem:[#allocation68_spill] sm:$0xff] %v4624_v9  ;;  %1067 = vmatmul.mubr.f32.gmra.mrb[6].mxu1 %v5605_v34  ;;  %v4647_v49 = vpack.c.bf16 %v5444_v4, %v5447_v13  ;;  %v4660_v34 = vld [vmem:[#allocation6 + $0x1a0] sm:$0xff]  ;;  %v5610_v4 = vpack.c.bf16 %v4254_v23, %v4252_v37  ;;  %v5458_v37 = vand.u32 4294901760, %v4629_v35  ;;  %v4679_v23 = vld [vmem:[#allocation6 + $0x1b0] sm:$0xff] }
 0x184   :  { %5609 = vst [vmem:[#allocation73_spill] sm:$0xff] %v4653_v46  ;;  %3146 = vmatpush3.bf16.msra.mxu1 %v4055_v11  ;;  %2482 = vmatprep.mubr.msk.f32.mxu1 %vm353_vm0, %v5573_v31  ;;  %v5455_v11 = vand.u32 4294901760, %v4603_v29  ;;  %v4671_v13 = vld [vmem:[#allocation6 + $0x120] sm:$0xff]  ;;  %v5461_v63 = vand.u32 4294901760, %v4660_v34  ;;  %v1608_v18 = vsub.f32 %v4598_v56, %v5454_v41 }
 0x185   :  { %5608 = vst [vmem:[#allocation72_spill] sm:$0xff] %v4647_v49  ;;  %3148 = vmatprep.subr.bf16.mxu1 %v4077_v2  ;;  %v5457_v2 = vand.u32 4294901760, %v4636_v59  ;;  %v1622_v41 = vsub.f32 %v4629_v35, %v5458_v37  ;;  %v5618_v37 = vand.u32 4294901760, %v4679_v23  ;;  %v4754_v49 = vld [vmem:[#allocation6 + $0x130] sm:$0xff] }
 0x186   :  { %3074 = vmatpush3.bf16.msra.mxu0 %v5610_v4  ;;  %v1601_v4 = vsub.f32 %v4593_v33, %v5453_v42 }
 0x187   :  { %3108 = vmatprep.subr.bf16.mxu0 %v4322_v45  ;;  %v5459_v45 = vand.u32 4294901760, %v4671_v13  ;;  %v1623_v46 = vand.u32 4294901760, %v1622_v41 }
 0x188   :  { %3150 = vmatpush3.bf16.msra.mxu1 %v4098_v38  ;;  %v1489_v38 = vsub.f32 %v4603_v29, %v5455_v11  ;;  %v1503_v11 = vsub.f32 %v4636_v59, %v5457_v2 }
 0x189   :  { %939 = vmatmul.mubr.f32.vlgmr.msra.gmra.mrb[4].mxu0 %v4433_v27  ;;  %3152 = vmatprep.subr.bf16.mxu1 %v4128_v52  ;;  %v5612_v52 = vand.u32 4294901760, %v4641_v40  ;;  %v5614_v27 = vand.u32 4294901760, %v4662_v44  ;;  %v4733_v2 = vsub.f32 %v4671_v13, %v5459_v45  ;;  %v4750_v45 = vsub.f32 %v4679_v23, %v5618_v37 }
 0x18a   :  { %945 = vmatprep.mubr.f32.mxu0 %v4460_v47  ;;  %3110 = vmatpush3.bf16.msra.mxu0 %v4328_v39  ;;  %v1496_v47 = vsub.f32 %v4619_v1, %v5456_v10  ;;  %v5611_v39 = vand.u32 4294901760, %v4624_v9  ;;  %v4721_v10 = vsub.f32 %v4660_v34, %v5461_v63  ;;  %v4847_v1 = vld [vmem:[#allocation6 + $0x150] sm:$0xff] }
 0x18b   :  { %3112 = vmatprep.subr.bf16.mxu0 %v4334_v22  ;;  %v1510_v22 = vsub.f32 %v4641_v40, %v5612_v52  ;;  %5616 = vst [vmem:[#allocation76_spill] sm:$0xff] %v4733_v2  ;;  %v4738_v52 = vsub.f32 %v4673_v6, %v5460_v50  ;;  %5619 = vst [vmem:[#allocation78_spill] sm:$0xff] %v4750_v45  ;;  %v1490_v50 = vand.u32 4294901760, %v1489_v38  ;;  %v4756_v40 = vld [vmem:[#allocation6 + $0x138] sm:$0xff]  ;;  %v5472_v41 = vand.u32 4294901760, %v4750_v45  ;;  %v4784_v38 = vld [vmem:[#allocation6 + $0x1c8] sm:$0xff] }
 0x18c   :  { %v1615_v42 = vsub.f32 %v4624_v9, %v5611_v39  ;;  %5613 = vst [vmem:[#allocation74_spill] sm:$0xff] %v4721_v10  ;;  %v4726_v39 = vsub.f32 %v4662_v44, %v5614_v27  ;;  %3154 = vmatpush3.bf16.msra.mxu1 %v5577_v58  ;;  %v1609_v27 = vand.u32 4294901760, %v1608_v18  ;;  %v4745_v58 = vld [vmem:[#allocation6 + $0x1b8] sm:$0xff]  ;;  %v1504_v18 = vand.u32 4294901760, %v1503_v11 }
 0x18d   :  { %948 = vmatmul.mubr.f32.gmra.mrb[6].mxu0 %v4462_v57  ;;  %5617 = vst [vmem:[#allocation77_spill] sm:$0xff] %v4738_v52  ;;  %v1602_v57 = vand.u32 4294901760, %v1601_v4  ;;  %3156 = vmatprep.subr.bf16.mxu1 %v5579_v28  ;;  %v1511_v4 = vand.u32 4294901760, %v1510_v22  ;;  %v5469_v59 = vand.u32 4294901760, %v4721_v10  ;;  %v5477_v11 = vand.u32 4294901760, %v4754_v49  ;;  %v4772_v28 = vld [vmem:[#allocation6 + $0x1c0] sm:$0xff] }
 0x18e   :  { %5615 = vst [vmem:[#allocation75_spill] sm:$0xff] %v4726_v39  ;;  %3114 = vmatpush3.bf16.msra.mxu0 %v4340_v19  ;;  %2478 = vmatprep.mubr.msk.f32.mxu0 %vm353_vm0, %v5573_v31  ;;  %v1497_v19 = vand.u32 4294901760, %v1496_v47  ;;  %v1616_v63 = vand.u32 4294901760, %v1615_v42  ;;  %v5468_v35 = vand.u32 4294901760, %v4726_v39  ;;  %v5620_v42 = vld [vmem:[#allocation52_spill] sm:$0xff]  ;;  %v5621_v47 = vld [vmem:[#allocation53_spill] sm:$0xff] }
 0x18f   :  { %3116 = vmatprep.subr.bf16.mxu0 %v4346_v15  ;;  %v3203_v22 = vpack.c.bf16 %v1609_v27, %v1602_v57  ;;  %v4776_v37 = vpack.c.bf16 %v1511_v4, %v1504_v18  ;;  %v5624_v27 = vand.u32 4294901760, %v4733_v2  ;;  %v5625_v18 = vand.u32 4294901760, %v4738_v52 }
 0x190   :  { %3158 = vmatpush3.bf16.msra.mxu1 %v5581_v21  ;;  %v4770_v21 = vpack.c.bf16 %v1497_v19, %v1490_v50  ;;  %v4774_v15 = vpack.c.bf16 %v1623_v46, %v1616_v63  ;;  %v4788_v50 = vld [vmem:[#allocation6 + $0x148] sm:$0xff]  ;;  %v5622_v63 = vand.u32 4294901760, %v4527_v43  ;;  %v5623_v46 = vand.u32 4294901760, %v4529_v48  ;;  %v5628_v43 = vld [vmem:[#allocation54_spill] sm:$0xff] }
 0x191   :  { %3160 = vmatprep.subr.bf16.mxu1 %v5583_v25  ;;  %v1629_v25 = vsub.f32 %v4721_v10, %v5469_v59  ;;  %v1517_v19 = vsub.f32 %v4733_v2, %v5624_v27  ;;  %v1524_v4 = vsub.f32 %v4738_v52, %v5625_v18  ;;  %v4813_v48 = vadd.s32 384, %v4410_v36  ;;  %v4830_v18 = vld [vmem:[#allocation6 + $0x1d8] sm:$0xff] }
 0x192   :  { %3118 = vmatpush3.bf16.msra.mxu0 %v5620_v42  ;;  %v1636_v42 = vsub.f32 %v4726_v39, %v5468_v35  ;;  %v4795_v57 = vpack.c.bf16 %v5623_v46, %v5622_v63  ;;  %v5626_v35 = vand.u32 4294901760, %v4745_v58  ;;  %v4818_v63 = vsub.f32 %v4750_v45, %v5472_v41  ;;  %v5650_v41 = vld [vmem:[#allocation58_spill] sm:$0xff] }
 0x193   :  { %3120 = vmatprep.subr.bf16.mxu0 %v5621_v47  ;;  %v4786_v47 = vld [vmem:[#allocation6 + $0x140] sm:$0xff]  ;;  %v4823_v46 = vsub.f32 %v4754_v49, %v5477_v11  ;;  %v5486_v45 = vand.u32 4294901760, %v4788_v50  ;;  %v1630_v2 = vand.u32 4294901760, %v1629_v25  ;;  %v5633_v39 = vand.u32 4294901760, %v4531_v55  ;;  %v4849_v25 = vld [vmem:[#allocation6 + $0x158] sm:$0xff] }
 0x194   :  { %3162 = vmatpush3.bf16.msra.mxu1 %v4263_v17  ;;  %v4806_v59 = vsub.f32 %v4745_v58, %v5626_v35  ;;  %v4808_v17 = vld [vmem:[#allocation6 + $0x1d0] sm:$0xff]  ;;  %v5630_v35 = vand.u32 4294901760, %v4756_v40  ;;  %v1637_v11 = vand.u32 4294901760, %v1636_v42  ;;  %v5634_v10 = vand.u32 4294901760, %v4539_v61 }
 0x195   :  { %3164 = vmatprep.subr.bf16.mxu1 %v4271_v51  ;;  %5629 = vst [vmem:[#allocation53_spill] sm:$0xff] %v4823_v46  ;;  %v5632_v51 = vld [vmem:[#allocation55_spill] sm:$0xff]  ;;  %v5489_v9 = vand.u32 4294901760, %v4808_v17  ;;  %v5635_v42 = vld [vmem:[#allocation56_spill] sm:$0xff]  ;;  %vm355_vm4 = vcmp.eq.s32.totalorder %v4415_v32, %v4813_v48  ;;  %v4877_v61 = vsub.f32 %v4788_v50, %v5486_v45  ;;  %v5646_v52 = vmov 0.0  }
 0x196   :  { %5627 = vst [vmem:[#allocation52_spill] sm:$0xff] %v4806_v59  ;;  %3122 = vmatpush3.bf16.msra.mxu0 %v5628_v43  ;;  %v4828_v27 = vsub.f32 %v4756_v40, %v5630_v35  ;;  %v4841_v35 = vpack.c.bf16 %v5634_v10, %v5633_v39  ;;  %v1525_v43 = vand.u32 4294901760, %v1524_v4  ;;  %v5636_v10 = vld [vmem:[#allocation57_spill] sm:$0xff]  ;;  %v5637_v39 = vand.u32 4294901760, %v4772_v28 }
 0x197   :  { %3124 = vmatprep.subr.bf16.mxu0 %v5632_v51  ;;  %v1518_v51 = vand.u32 4294901760, %v1517_v19  ;;  %v5639_v4 = vand.u32 4294901760, %v4784_v38  ;;  %5643 = vst [vmem:[#allocation79_spill] sm:$0xff] %v4877_v61  ;;  %v2469_v45 = vsel %vm355_vm4, 1.0, %v5646_v52 }
 0x198   :  { %5631 = vst [vmem:[#allocation54_spill] sm:$0xff] %v4828_v27  ;;  %3166 = vmatpush3.bf16.msra.mxu1 %v4276_v54  ;;  %v4862_v19 = vsub.f32 %v4772_v28, %v5637_v39  ;;  %v4881_v54 = vld [vmem:[#allocation6 + $0x1e8] sm:$0xff]  ;;  %v3211_v39 = vpack.c.bf16 %v1637_v11, %v1630_v2  ;;  %v5647_v2 = vand.u32 4294901760, %v4806_v59  ;;  %v5652_v33 = vand.u32 4294901760, %v4828_v27 }
 0x199   :  { %3168 = vmatprep.subr.bf16.mxu1 %v4278_v53  ;;  %v4867_v53 = vsub.f32 %v4784_v38, %v5639_v4  ;;  %v4886_v4 = vsub.f32 %v4808_v17, %v5489_v9  ;;  %v4895_v29 = vpack.c.bf16 %v1525_v43, %v1518_v51  ;;  %v5648_v9 = vand.u32 4294901760, %v4830_v18 }
 0x19a   :  { %3126 = vmatpush3.bf16.msra.mxu0 %v5635_v42  ;;  %5638 = vst [vmem:[#allocation55_spill] sm:$0xff] %v4862_v19  ;;  %v5641_v42 = vand.u32 4294901760, %v4786_v47  ;;  %v1650_v11 = vsub.f32 %v4806_v59, %v5647_v2  ;;  %v1538_v43 = vsub.f32 %v4828_v27, %v5652_v33  ;;  %v4914_v59 = vld [vmem:[#allocation6 + $0x160] sm:$0xff]  ;;  %v4927_v33 = vsub.f32 %v2469_v45, %v2469_v45  ;;  %v5659_v27 = vld [vmem:[#allocation60_spill] sm:$0xff]  ;;  %v5662_v2 = vld [vmem:[#allocation61_spill] sm:$0xff] }
 0x19b   :  { %3128 = vmatprep.subr.bf16.mxu0 %v5636_v10  ;;  %5640 = vst [vmem:[#allocation56_spill] sm:$0xff] %v4867_v53  ;;  %v4879_v10 = vld [vmem:[#allocation6 + $0x1e0] sm:$0xff]  ;;  %5645 = vst [vmem:[#allocation81_spill] sm:$0xff] %v4886_v4  ;;  %v4903_v56 = vsub.f32 %v4830_v18, %v5648_v9  ;;  %v5655_v9 = vld [vmem:[#allocation59_spill] sm:$0xff]  ;;  %v5656_v51 = vand.u32 4294901760, %v4847_v1 }
 0x19c   :  { %v4872_v55 = vsub.f32 %v4786_v47, %v5641_v42  ;;  %5644 = vst [vmem:[#allocation80_spill] sm:$0xff] %v4879_v10  ;;  %3170 = vmatpush3.bf16.msra.mxu1 %v4280_v60  ;;  %v5651_v60 = vand.u32 4294901760, %v4823_v46  ;;  %5653 = vst [vmem:[#allocation58_spill] sm:$0xff] %v4914_v59  ;;  %v1651_v45 = vand.u32 4294901760, %v1650_v11  ;;  %v1539_v7 = vand.u32 4294901760, %v1538_v43 }
 0x19d   :  { %5649 = vst [vmem:[#allocation82_spill] sm:$0xff] %v4903_v56  ;;  %3204 = vmatprep.subr.bf16.mxu1 %v3203_v22  ;;  %v5657_v22 = vand.u32 4294901760, %v4849_v25  ;;  %v5660_v3 = vand.u32 4294901760, %v4879_v10 }
 0x19e   :  { %5642 = vst [vmem:[#allocation57_spill] sm:$0xff] %v4872_v55  ;;  %3130 = vmatpush3.bf16.msra.mxu0 %v5650_v41  ;;  %v1531_v42 = vsub.f32 %v4823_v46, %v5651_v60  ;;  %v5658_v46 = vld [vmem:[#allocation63_spill] sm:$0xff]  ;;  %v5665_v43 = vand.u32 4294901760, %v4872_v55  ;;  %v5666_v41 = vand.u32 4294901760, %v4877_v61 }
 0x19f   :  { %3132 = vmatprep.subr.bf16.mxu0 %v5655_v9  ;;  %2483 = vmatmul.mubr.msk.f32.vlgmr.msra.gmra.mrb[8].mxu1 %vm352_vm1, %v5573_v31  ;;  %v4933_v9 = vsub.f32 %v4847_v1, %v5656_v51  ;;  %v4938_v60 = vsub.f32 %v4849_v25, %v5657_v22  ;;  %v4953_v30 = vsub.f32 %v4879_v10, %v5660_v3  ;;  %v5663_v51 = vand.u32 4294901760, %v4862_v19 }
 0x1a0   :  { %2484 = vmatprep.mubr.msk.f32.mxu1 %vm357_vm2, %v5573_v31  ;;  %3206 = vmatpush3.bf16.msra.mxu1 %v4770_v21  ;;  %v1532_v22 = vand.u32 4294901760, %v1531_v42  ;;  %v5661_v21 = vand.u32 4294901760, %v4881_v54  ;;  %v1545_v3 = vsub.f32 %v4872_v55, %v5665_v43  ;;  %v1552_v10 = vsub.f32 %v4877_v61, %v5666_v41 }
 0x1a1   :  { %3208 = vmatprep.subr.bf16.mxu1 %v4774_v15  ;;  %v5664_v15 = vand.u32 4294901760, %v4867_v53  ;;  %v5668_v41 = vand.u32 4294901760, %v4903_v56  ;;  %v5673_v55 = vand.u32 4294901760, %v4541_v0  ;;  %v5676_v0 = vand.u32 4294901760, %v4933_v9 }
 0x1a2   :  { %3134 = vmatpush3.bf16.msra.mxu0 %v5659_v27  ;;  %v4958_v11 = vsub.f32 %v4881_v54, %v5661_v21  ;;  %v1657_v27 = vsub.f32 %v4862_v19, %v5663_v51  ;;  %v5667_v51 = vand.u32 4294901760, %v4886_v4  ;;  %vm359_vm6 = vcmp.eq.s32.totalorder %v5658_v46, %v4813_v48 }
 0x1a3   :  { %3136 = vmatprep.subr.bf16.mxu0 %v5662_v2  ;;  %v1664_v42 = vsub.f32 %v4867_v53, %v5664_v15  ;;  %2485 = vmatmul.mubr.msk.f32.gmra.mrb[10].mxu1 %vm356_vm3, %v5573_v31  ;;  %v1678_v43 = vsub.f32 %v4903_v56, %v5668_v41  ;;  %v5669_v2 = vand.u32 4294901760, %v4914_v59  ;;  %v5672_v15 = vand.u32 4294901760, %v4818_v63 }
 0x1a4   :  { %v1671_v21 = vsub.f32 %v4886_v4, %v5667_v51  ;;  %3210 = vmatpush3.bf16.msra.mxu1 %v4776_v37  ;;  %2486 = vmatprep.mubr.msk.f32.mxu1 %vm355_vm4, %v5573_v31  ;;  %v5670_v51 = vand.u32 4294901760, %v4916_v8  ;;  %v5671_v37 = vld [vmem:[#allocation62_spill] sm:$0xff]  ;;  %v5674_v41 = vand.u32 4294901760, %v4543_v16  ;;  %v5520_v19 = vand.u32 4294901760, %v4958_v11 }
 0x1a5   :  { %v4994_v61 = vsub.f32 %v4914_v59, %v5669_v2  ;;  %3212 = vmatprep.subr.bf16.mxu1 %v3211_v39  ;;  %v3215_v4 = vpack.c.bf16 %v1651_v45, %v5672_v15  ;;  %v5519_v2 = vand.u32 4294901760, %v4953_v30  ;;  %v1665_v59 = vand.u32 4294901760, %v1664_v42 }
 0x1a6   :  { %v4999_v53 = vsub.f32 %v4916_v8, %v5670_v51  ;;  %3138 = vmatpush3.bf16.msra.mxu0 %v5671_v37  ;;  %v5008_v56 = vpack.c.bf16 %v5674_v41, %v5673_v55  ;;  %v3217_v51 = vpack.c.bf16 %v1539_v7, %v1532_v22  ;;  %v1658_v8 = vand.u32 4294901760, %v1657_v27 }
 0x1a7   :  { %3172 = vmatprep.subr.bf16.mxu0 %v4795_v57  ;;  %v1546_v37 = vand.u32 4294901760, %v1545_v3  ;;  %v5675_v39 = vand.u32 4294901760, %v4927_v33  ;;  %v1553_v45 = vand.u32 4294901760, %v1552_v10  ;;  %v1559_v16 = vsub.f32 %v4933_v9, %v5676_v0 }
 0x1a8   :  { %v5677_v55 = vand.u32 4294901760, %v4938_v60  ;;  %3214 = vmatpush3.bf16.msra.mxu1 %v4895_v29  ;;  %v1672_v7 = vand.u32 4294901760, %v1671_v21  ;;  %v1679_v22 = vand.u32 4294901760, %v1678_v43  ;;  %v5522_v27 = vand.u32 4294901760, %v4994_v61 }
 0x1a9   :  { %v1457_v63 = vsub.f32 %v4927_v33, %v5675_v39  ;;  %2479 = vmatmul.mubr.msk.f32.vlgmr.msra.gmra.mrb[8].mxu0 %vm352_vm1, %v5573_v31  ;;  %v5521_v10 = vand.u32 4294901760, %v4999_v53  ;;  %v5678_v42 = vand.u32 4294901760, %v4549_v20  ;;  %v5679_v3 = vand.u32 4294901760, %v4551_v24  ;;  %3216 = vmatprep.subr.bf16.mxu1 %v3215_v4 }
 0x1aa   :  { %v1566_v15 = vsub.f32 %v4938_v60, %v5677_v55  ;;  %2480 = vmatprep.mubr.msk.f32.mxu0 %vm357_vm2, %v5573_v31  ;;  %3174 = vmatpush3.bf16.msra.mxu0 %v4841_v35  ;;  %v1685_v29 = vsub.f32 %v4953_v30, %v5519_v2  ;;  %v1692_v21 = vsub.f32 %v4958_v11, %v5520_v19  ;;  %v5680_v43 = vand.u32 4294901760, %v4660_v34 }
 0x1ab   :  { %v5038_v41 = vpack.c.bf16 %v5679_v3, %v5678_v42  ;;  %3176 = vmatprep.subr.bf16.mxu0 %v5008_v56  ;;  %v3219_v12 = vpack.c.bf16 %v1665_v59, %v1658_v8  ;;  %v5681_v20 = vand.u32 4294901760, %v4662_v44  ;;  %v5682_v24 = vand.u32 4294901760, %v4671_v13 }
 0x1ac   :  { %v5683_v0 = vand.u32 4294901760, %v4673_v6  ;;  %v1458_v42 = vand.u32 4294901760, %v1457_v63  ;;  %v3221_v3 = vpack.c.bf16 %v1553_v45, %v1546_v37  ;;  %v1560_v2 = vand.u32 4294901760, %v1559_v16  ;;  %3218 = vmatpush3.bf16.msra.mxu1 %v3217_v51 }
 0x1ad   :  { %v5051_v39 = vpack.c.bf16 %v5681_v20, %v5680_v43  ;;  %v1567_v19 = vand.u32 4294901760, %v1566_v15  ;;  %2481 = vmatmul.mubr.msk.f32.gmra.mrb[10].mxu0 %vm356_vm3, %v5573_v31  ;;  %v3223_v8 = vpack.c.bf16 %v1679_v22, %v1672_v7  ;;  %v1573_v44 = vsub.f32 %v4994_v61, %v5522_v27  ;;  %3220 = vmatprep.subr.bf16.mxu1 %v3219_v12 }
 0x1ae   :  { %v5057_v55 = vpack.c.bf16 %v5683_v0, %v5682_v24  ;;  %v1580_v6 = vsub.f32 %v4999_v53, %v5521_v10  ;;  %3178 = vmatpush3.bf16.msra.mxu0 %v5038_v41  ;;  %1459 = vmatprep.mubr.f32.mxu0 %v1458_v42  ;;  %v1686_v13 = vand.u32 4294901760, %v1685_v29  ;;  %v1693_v59 = vand.u32 4294901760, %v1692_v21  ;;  %v5736_v10 = vld [vmem:[#allocation81_spill] sm:$0xff] }
 0x1af   :  { %v5684_v34 = vand.u32 4294901760, %v4556_v5  ;;  %v5685_v51 = vand.u32 4294901760, %v4565_v14  ;;  %3180 = vmatprep.subr.bf16.mxu0 %v5051_v39  ;;  %v5686_v63 = vand.u32 4294901760, %v4679_v23  ;;  %v5687_v45 = vand.u32 4294901760, %v4745_v58 }
 0x1b0   :  { %v5084_v15 = vadd.s32 256, %v4410_v36  ;;  %v3225_v7 = vpack.c.bf16 %v1567_v19, %v1560_v2  ;;  %3222 = vmatpush3.bf16.msra.mxu1 %v3221_v3  ;;  %v1574_v22 = vand.u32 4294901760, %v1573_v44  ;;  %v1581_v29 = vand.u32 4294901760, %v1580_v6 }
 0x1b1   :  { %v1699_v4 = vsub.f32 %v4556_v5, %v5684_v34  ;;  %v1706_v37 = vsub.f32 %v4565_v14, %v5685_v51  ;;  %v5081_v16 = vpack.c.bf16 %v5687_v45, %v5686_v63  ;;  %v5688_v21 = vand.u32 4294901760, %v4570_v26  ;;  %3224 = vmatprep.subr.bf16.mxu1 %v3223_v8  ;;  %v5700_v63 = vld [vmem:[#allocation80_spill] sm:$0xff] }
 0x1b2   :  { %v5689_v12 = vand.u32 4294901760, %v4575_v62  ;;  %3182 = vmatpush3.bf16.msra.mxu0 %v5057_v55  ;;  %v5690_v23 = vand.u32 4294901760, %v4754_v49  ;;  %v5691_v36 = vand.u32 4294901760, %v4756_v40  ;;  %v3227_v19 = vpack.c.bf16 %v1693_v59, %v1686_v13 }
 0x1b3   :  { %v1587_v43 = vsub.f32 %v4570_v26, %v5688_v21  ;;  %v1700_v2 = vand.u32 4294901760, %v1699_v4  ;;  %v1707_v24 = vand.u32 4294901760, %v1706_v37  ;;  %3184 = vmatprep.subr.bf16.mxu0 %v5081_v16  ;;  %v5692_v0 = vand.u32 4294901760, %v4772_v28 }
 0x1b4   :  { %v1594_v20 = vsub.f32 %v4575_v62, %v5689_v12  ;;  %v5097_v58 = vpack.c.bf16 %v5691_v36, %v5690_v23  ;;  %v5693_v42 = vand.u32 4294901760, %v4784_v38  ;;  %vm354_vm5 = vcmp.eq.s32.totalorder %v4415_v32, %v5084_v15  ;;  %3226 = vmatpush3.bf16.msra.mxu1 %v3225_v7  ;;  %v5707_v23 = vld [vmem:[#allocation48_spill] sm:$0xff] }
 0x1b5   :  { %v3229_v49 = vpack.c.bf16 %v1581_v29, %v1574_v22  ;;  %v1588_v8 = vand.u32 4294901760, %v1587_v43  ;;  %3228 = vmatprep.subr.bf16.mxu1 %v3227_v19  ;;  %v5694_v44 = vand.u32 4294901760, %v4786_v47  ;;  %v5695_v6 = vand.u32 4294901760, %v4788_v50  ;;  %v5705_v43 = vld [vmem:[#allocation83_spill] sm:$0xff]  ;;  %v5709_v19 = vld [vmem:[#allocation49_spill] sm:$0xff] }
 0x1b6   :  { %v5104_v3 = vpack.c.bf16 %v5693_v42, %v5692_v0  ;;  %v1595_v40 = vand.u32 4294901760, %v1594_v20  ;;  %3186 = vmatpush3.bf16.msra.mxu0 %v5097_v58  ;;  %v3231_v28 = vpack.c.bf16 %v1707_v24, %v1700_v2  ;;  %v5696_v38 = vand.u32 4294901760, %v4808_v17  ;;  %v5711_v42 = vld [vmem:[#allocation50_spill] sm:$0xff] }
 0x1b7   :  { %v5113_v13 = vpack.c.bf16 %v5695_v6, %v5694_v44  ;;  %v5697_v59 = vand.u32 4294901760, %v4830_v18  ;;  %v2468_v47 = vsel %vm354_vm5, 1.0, %v5646_v52  ;;  %v2473_v4 = vsel %vm359_vm6, 1.0, %v5646_v52 }
 0x1b8   :  { %3188 = vmatprep.subr.bf16.mxu0 %v5104_v3  ;;  %3230 = vmatpush3.bf16.msra.mxu1 %v3229_v49  ;;  %v3233_v50 = vpack.c.bf16 %v1595_v40, %v1588_v8  ;;  %vm358_vm7 = vcmp.eq.s32.totalorder %v5658_v46, %v5084_v15  ;;  %v5698_v17 = vand.u32 4294901760, %v4847_v1  ;;  %v5699_v18 = vand.u32 4294901760, %v4849_v25  ;;  %v5703_v25 = vld [vmem:[#allocation58_spill] sm:$0xff]  ;;  %v5713_v8 = vld [vmem:[#allocation51_spill] sm:$0xff] }
 0x1b9   :  { %v5122_v34 = vpack.c.bf16 %v5697_v59, %v5696_v38  ;;  %3232 = vmatprep.subr.bf16.mxu1 %v3231_v28  ;;  %v5141_v37 = vsub.f32 %v2468_v47, %v2468_v47  ;;  %v5701_v45 = vand.u32 4294901760, %v5700_v63  ;;  %v5702_v7 = vand.u32 4294901760, %v4881_v54  ;;  %v5715_v28 = vld [vmem:[#allocation64_spill] sm:$0xff]  ;;  %v5716_v38 = vld [vmem:[#allocation65_spill] sm:$0xff] }
 0x1ba   :  { %3190 = vmatpush3.bf16.msra.mxu0 %v5113_v13  ;;  %v5139_v51 = vpack.c.bf16 %v5699_v18, %v5698_v17  ;;  %v5150_v29 = vsub.f32 %v2473_v4, %v2473_v4  ;;  %v2472_v1 = vsel %vm358_vm7, 1.0, %v5646_v52  ;;  %v5704_v21 = vand.u32 4294901760, %v5703_v25  ;;  %v5718_v17 = vld [vmem:[#allocation66_spill] sm:$0xff]  ;;  %v5719_v18 = vld [vmem:[#allocation67_spill] sm:$0xff]  ;;  %v5721_v25 = vld [vmem:[#allocation69_spill] sm:$0xff] }
 0x1bb   :  { %3192 = vmatprep.subr.bf16.mxu0 %v5122_v34  ;;  %v5148_v22 = vpack.c.bf16 %v5702_v7, %v5701_v45  ;;  %v5706_v12 = vand.u32 4294901760, %v5705_v43  ;;  %v5165_v54 = vsub.f32 %v2472_v1, %v2472_v1  ;;  %v5708_v36 = vand.u32 4294901760, %v5707_v23  ;;  %v5720_v1 = vld [vmem:[#allocation68_spill] sm:$0xff]  ;;  %v5723_v23 = vld [vmem:[#allocation71_spill] sm:$0xff] }
 0x1bc   :  { %3234 = vmatpush3.bf16.msra.mxu1 %v3233_v50  ;;  %v5710_v2 = vand.u32 4294901760, %v5709_v19  ;;  %v1462_v24 = vand.u32 4294901760, %v5141_v37  ;;  %v1471_v0 = vand.u32 4294901760, %v5150_v29  ;;  %v5712_v49 = vand.u32 4294901760, %v5711_v42  ;;  %v5725_v42 = vld [vmem:[#allocation75_spill] sm:$0xff] }
 0x1bd   :  { %3268 = vmatprep.subr.bf16.mxu1 %v4795_v57  ;;  %v5162_v20 = vpack.c.bf16 %v5706_v12, %v5704_v21  ;;  %v5714_v40 = vand.u32 4294901760, %v5713_v8  ;;  %v3235_v59 = vpack.c.bf16 %v5716_v38, %v5715_v28  ;;  %v1477_v47 = vand.u32 4294901760, %v5165_v54  ;;  %v5722_v12 = vld [vmem:[#allocation70_spill] sm:$0xff]  ;;  %v5726_v8 = vld [vmem:[#allocation76_spill] sm:$0xff] }
 0x1be   :  { %3194 = vmatpush3.bf16.msra.mxu0 %v5139_v51  ;;  %v5171_v52 = vpack.c.bf16 %v5710_v2, %v5708_v36  ;;  %v1463_v6 = vsub.f32 %v5141_v37, %v1462_v24  ;;  %v1472_v50 = vsub.f32 %v5150_v29, %v1471_v0  ;;  %v5717_v4 = vand.u32 4294901760, %v4927_v33  ;;  %v5724_v2 = vld [vmem:[#allocation74_spill] sm:$0xff] }
 0x1bf   :  { %3196 = vmatprep.subr.bf16.mxu0 %v5148_v22  ;;  %2487 = vmatmul.mubr.msk.f32.vlgmr.msra.gmra.mrb[12].mxu1 %vm354_vm5, %v5573_v31  ;;  %v5190_v44 = vpack.c.bf16 %v5714_v40, %v5712_v49  ;;  %v3237_v63 = vpack.c.bf16 %v5719_v18, %v5718_v17  ;;  %v1478_v7 = vsub.f32 %v5165_v54, %v1477_v47  ;;  %v5727_v40 = vld [vmem:[#allocation77_spill] sm:$0xff] }
 0x1c0   :  { %2488 = vmatprep.mubr.msk.f32.mxu1 %vm359_vm6, %v5573_v31  ;;  %3270 = vmatpush3.bf16.msra.mxu1 %v4841_v35  ;;  %v1464_v45 = vand.u32 4294901760, %v1463_v6  ;;  %v3239_v21 = vpack.c.bf16 %v5721_v25, %v5720_v1  ;;  %v1473_v43 = vand.u32 4294901760, %v1472_v50  ;;  %v3241_v36 = vpack.c.bf16 %v5723_v23, %v5722_v12  ;;  %v5729_v50 = vld [vmem:[#allocation52_spill] sm:$0xff] }
 0x1c1   :  { %3272 = vmatprep.subr.bf16.mxu1 %v5008_v56  ;;  %v1479_v19 = vand.u32 4294901760, %v1478_v7  ;;  %v3243_v49 = vpack.c.bf16 %v5725_v42, %v5724_v2  ;;  %v3245_v6 = vpack.c.bf16 %v5727_v40, %v5726_v8 }
 0x1c2   :  { %3198 = vmatpush3.bf16.msra.mxu0 %v5162_v20 }
 0x1c3   :  { %3200 = vmatprep.subr.bf16.mxu0 %v5171_v52  ;;  %2489 = vmatmul.mubr.msk.f32.gmra.mrb[14].mxu1 %vm358_vm7, %v5573_v31 }
 0x1c4   :  { %3274 = vmatpush3.bf16.msra.mxu1 %v5038_v41  ;;  %1970 = vmatprep.mubr.f32.mxu1 %v5717_v4 }
 0x1c5   :  { %3276 = vmatprep.subr.bf16.mxu1 %v5051_v39 }
 0x1c6   :  { %3202 = vmatpush3.bf16.msra.mxu0 %v5190_v44 }
 0x1c7   :  { %3236 = vmatprep.subr.bf16.mxu0 %v3235_v59  ;;  %v5728_v59 = vld [vmem:[#allocation78_spill] sm:$0xff] }
 0x1c8   :  { %3278 = vmatpush3.bf16.msra.mxu1 %v5057_v55  ;;  %v3247_v4 = vpack.c.bf16 %v5729_v50, %v5728_v59 }
 0x1c9   :  { %1465 = vmatmul.mubr.f32.vlgmr.msra.gmra.mrb[12].mxu0 %v1464_v45  ;;  %3280 = vmatprep.subr.bf16.mxu1 %v5081_v16  ;;  %v5731_v45 = vld [vmem:[#allocation54_spill] sm:$0xff] }
 0x1ca   :  { %1474 = vmatprep.mubr.f32.mxu0 %v1473_v43  ;;  %3238 = vmatpush3.bf16.msra.mxu0 %v3237_v63  ;;  %v5730_v63 = vld [vmem:[#allocation53_spill] sm:$0xff] }
 0x1cb   :  { %3240 = vmatprep.subr.bf16.mxu0 %v3239_v21  ;;  %v3249_v7 = vpack.c.bf16 %v5731_v45, %v5730_v63  ;;  %v5732_v21 = vld [vmem:[#allocation55_spill] sm:$0xff] }
 0x1cc   :  { %3282 = vmatpush3.bf16.msra.mxu1 %v5097_v58 }
 0x1cd   :  { %1480 = vmatmul.mubr.f32.gmra.mrb[14].mxu0 %v1479_v19  ;;  %3284 = vmatprep.subr.bf16.mxu1 %v5104_v3  ;;  %v5735_v19 = vld [vmem:[#allocation79_spill] sm:$0xff] }
 0x1ce   :  { %3242 = vmatpush3.bf16.msra.mxu0 %v3241_v36  ;;  %1854 = vmatprep.mubr.f32.mxu0 %v4927_v33  ;;  %v5733_v33 = vld [vmem:[#allocation56_spill] sm:$0xff]  ;;  %v5734_v36 = vld [vmem:[#allocation57_spill] sm:$0xff] }
 0x1cf   :  { %3244 = vmatprep.subr.bf16.mxu0 %v3243_v49  ;;  %v3251_v43 = vpack.c.bf16 %v5733_v33, %v5732_v21  ;;  %v3253_v49 = vpack.c.bf16 %v5735_v19, %v5734_v36 }
 0x1d0   :  { %3286 = vmatpush3.bf16.msra.mxu1 %v5113_v13 }
 0x1d1   :  { %3288 = vmatprep.subr.bf16.mxu1 %v5122_v34 }
 0x1d2   :  { %3246 = vmatpush3.bf16.msra.mxu0 %v3245_v6  ;;  %v5737_v6 = vld [vmem:[#allocation82_spill] sm:$0xff] }
 0x1d3   :  { %3248 = vmatprep.subr.bf16.mxu0 %v3247_v4  ;;  %v3255_v27 = vpack.c.bf16 %v5737_v6, %v5736_v10  ;;  %v3257_v4 = vpack.c.bf16 %v4938_v60, %v4933_v9 }
 0x1d4   :  { %3290 = vmatpush3.bf16.msra.mxu1 %v5139_v51 }
 0x1d5   :  { %3292 = vmatprep.subr.bf16.mxu1 %v5148_v22 }
 0x1d6   :  { %3250 = vmatpush3.bf16.msra.mxu0 %v3249_v7  ;;  %v3259_v7 = vpack.c.bf16 %v4958_v11, %v4953_v30 }
 0x1d7   :  { %3252 = vmatprep.subr.bf16.mxu0 %v3251_v43  ;;  %v3261_v43 = vpack.c.bf16 %v4999_v53, %v4994_v61 }
 0x1d8   :  { %3294 = vmatpush3.bf16.msra.mxu1 %v5162_v20 }
 0x1d9   :  { %3296 = vmatprep.subr.bf16.mxu1 %v5171_v52 }
 0x1da   :  { %3254 = vmatpush3.bf16.msra.mxu0 %v3253_v49  ;;  %v3263_v49 = vpack.c.bf16 %v4565_v14, %v4556_v5  ;;  %v5740_v14 = vand.u32 4294901760, %v5718_v17 }
 0x1db   :  { %3256 = vmatprep.subr.bf16.mxu0 %v3255_v27  ;;  %v5738_v27 = vand.u32 4294901760, %v5715_v28  ;;  %v5746_v28 = vand.u32 4294901760, %v5724_v2  ;;  %v5758_v2 = vand.u32 4294901760, %v5736_v10  ;;  %v5764_v10 = vand.u32 4294901760, %v4994_v61  ;;  %v5767_v61 = vld [vmem:[#allocation73_spill] sm:$0xff] }
 0x1dc   :  { %3298 = vmatpush3.bf16.msra.mxu1 %v5190_v44 }
 0x1dd   :  { %3332 = vmatprep.subr.bf16.mxu1 %v4795_v57  ;;  %v3265_v57 = vpack.c.bf16 %v4575_v62, %v4570_v26  ;;  %v5741_v26 = vand.u32 4294901760, %v5719_v18  ;;  %v5753_v18 = vand.u32 4294901760, %v5731_v45 }
 0x1de   :  { %3258 = vmatpush3.bf16.msra.mxu0 %v3257_v4  ;;  %v5739_v4 = vand.u32 4294901760, %v5716_v38  ;;  %v5747_v38 = vand.u32 4294901760, %v5725_v42  ;;  %v5759_v42 = vand.u32 4294901760, %v5737_v6 }
 0x1df   :  { %3260 = vmatprep.subr.bf16.mxu0 %v3259_v7  ;;  %1974 = vmatmul.mubr.f32.vlgmr.msra.gmra.mrb[16].mxu1 %v1462_v24  ;;  %v3301_v62 = vpack.c.bf16 %v5741_v26, %v5740_v14 }
 0x1e0   :  { %1981 = vmatprep.mubr.f32.mxu1 %v1471_v0  ;;  %3334 = vmatpush3.bf16.msra.mxu1 %v4841_v35  ;;  %v3299_v5 = vpack.c.bf16 %v5739_v4, %v5738_v27  ;;  %v5743_v35 = vand.u32 4294901760, %v5721_v25  ;;  %v5754_v25 = vand.u32 4294901760, %v5732_v21 }
 0x1e1   :  { %3336 = vmatprep.subr.bf16.mxu1 %v5008_v56  ;;  %v5742_v56 = vand.u32 4294901760, %v5720_v1 }
 0x1e2   :  { %3262 = vmatpush3.bf16.msra.mxu0 %v3261_v43 }
 0x1e3   :  { %3264 = vmatprep.subr.bf16.mxu0 %v3263_v49  ;;  %1985 = vmatmul.mubr.f32.gmra.mrb[18].mxu1 %v1477_v47  ;;  %v3303_v24 = vpack.c.bf16 %v5743_v35, %v5742_v56  ;;  %v3307_v47 = vpack.c.bf16 %v5747_v38, %v5746_v28 }
 0x1e4   :  { %3338 = vmatpush3.bf16.msra.mxu1 %v5038_v41  ;;  %2494 = vmatprep.mubr.msk.f32.mxu1 %vm355_vm4, %v5573_v31  ;;  %v5744_v41 = vand.u32 4294901760, %v5722_v12 }
 0x1e5   :  { %3340 = vmatprep.subr.bf16.mxu1 %v5051_v39  ;;  %v5745_v39 = vand.u32 4294901760, %v5723_v23 }
 0x1e6   :  { %3266 = vmatpush3.bf16.msra.mxu0 %v3265_v57 }
 0x1e7   :  { %3300 = vmatprep.subr.bf16.mxu0 %v3299_v5  ;;  %v3305_v0 = vpack.c.bf16 %v5745_v39, %v5744_v41 }
 0x1e8   :  { %3342 = vmatpush3.bf16.msra.mxu1 %v5057_v55  ;;  %v5748_v55 = vand.u32 4294901760, %v5726_v8  ;;  %v3319_v8 = vpack.c.bf16 %v5759_v42, %v5758_v2 }
 0x1e9   :  { %1857 = vmatmul.mubr.f32.vlgmr.msra.gmra.mrb[16].mxu0 %v5141_v37  ;;  %3344 = vmatprep.subr.bf16.mxu1 %v5081_v16  ;;  %v5749_v16 = vand.u32 4294901760, %v5727_v40 }
 0x1ea   :  { %1863 = vmatprep.mubr.f32.mxu0 %v5150_v29  ;;  %3302 = vmatpush3.bf16.msra.mxu0 %v3301_v62  ;;  %v5750_v29 = vand.u32 4294901760, %v5728_v59  ;;  %v5762_v59 = vand.u32 4294901760, %v4953_v30  ;;  %v5766_v30 = vld [vmem:[#allocation72_spill] sm:$0xff] }
 0x1eb   :  { %3304 = vmatprep.subr.bf16.mxu0 %v3303_v24  ;;  %v3309_v37 = vpack.c.bf16 %v5749_v16, %v5748_v55 }
 0x1ec   :  { %3346 = vmatpush3.bf16.msra.mxu1 %v5097_v58  ;;  %v5752_v58 = vand.u32 4294901760, %v5730_v63 }
 0x1ed   :  { %1866 = vmatmul.mubr.f32.gmra.mrb[18].mxu0 %v5165_v54  ;;  %3348 = vmatprep.subr.bf16.mxu1 %v5104_v3  ;;  %v5751_v54 = vand.u32 4294901760, %v5729_v50  ;;  %v5755_v3 = vand.u32 4294901760, %v5733_v33  ;;  %v5763_v50 = vand.u32 4294901760, %v4958_v11 }
 0x1ee   :  { %3306 = vmatpush3.bf16.msra.mxu0 %v3305_v0  ;;  %2490 = vmatprep.mubr.msk.f32.mxu0 %vm355_vm4, %v5573_v31  ;;  %v3313_v1 = vpack.c.bf16 %v5753_v18, %v5752_v58 }
 0x1ef   :  { %3308 = vmatprep.subr.bf16.mxu0 %v3307_v47  ;;  %v3311_v17 = vpack.c.bf16 %v5751_v54, %v5750_v29  ;;  %v3315_v12 = vpack.c.bf16 %v5755_v3, %v5754_v25  ;;  %v3323_v63 = vpack.c.bf16 %v5763_v50, %v5762_v59 }
 0x1f0   :  { %3350 = vmatpush3.bf16.msra.mxu1 %v5113_v13  ;;  %v5756_v13 = vand.u32 4294901760, %v5734_v36 }
 0x1f1   :  { %3352 = vmatprep.subr.bf16.mxu1 %v5122_v34  ;;  %v5757_v34 = vand.u32 4294901760, %v5735_v19 }
 0x1f2   :  { %3310 = vmatpush3.bf16.msra.mxu0 %v3309_v37 }
 0x1f3   :  { %3312 = vmatprep.subr.bf16.mxu0 %v3311_v17  ;;  %v3317_v23 = vpack.c.bf16 %v5757_v34, %v5756_v13 }
 0x1f4   :  { %3354 = vmatpush3.bf16.msra.mxu1 %v5139_v51  ;;  %v5760_v51 = vand.u32 4294901760, %v4933_v9 }
 0x1f5   :  { %3356 = vmatprep.subr.bf16.mxu1 %v5148_v22  ;;  %v5761_v22 = vand.u32 4294901760, %v4938_v60 }
 0x1f6   :  { %3314 = vmatpush3.bf16.msra.mxu0 %v3313_v1 }
 0x1f7   :  { %3316 = vmatprep.subr.bf16.mxu0 %v3315_v12  ;;  %v3321_v40 = vpack.c.bf16 %v5761_v22, %v5760_v51 }
 0x1f8   :  { %3358 = vmatpush3.bf16.msra.mxu1 %v5162_v20  ;;  %v5765_v20 = vand.u32 4294901760, %v4999_v53 }
 0x1f9   :  { %3360 = vmatprep.subr.bf16.mxu1 %v5171_v52 }
 0x1fa   :  { %3318 = vmatpush3.bf16.msra.mxu0 %v3317_v23  ;;  %v3325_v45 = vpack.c.bf16 %v5765_v20, %v5764_v10 }
 0x1fb   :  { %3320 = vmatprep.subr.bf16.mxu0 %v3319_v8 }
 0x1fc   :  { %3362 = vmatpush3.bf16.msra.mxu1 %v5190_v44 }
 0x1fe   :  { %3322 = vmatpush3.bf16.msra.mxu0 %v3321_v40 }
 0x1ff   :  { %3324 = vmatprep.subr.bf16.mxu0 %v3323_v63  ;;  %2495 = vmatmul.mubr.msk.f32.vlgmr.msra.gmra.mrb[20].mxu1 %vm354_vm5, %v5573_v31 }
 0x200   :  { %2496 = vmatprep.mubr.msk.f32.mxu1 %vm359_vm6, %v5573_v31 }
 0x202   :  { %3326 = vmatpush3.bf16.msra.mxu0 %v3325_v45 }
 0x203   :  { %3328 = vmatprep.subr.bf16.mxu0 %v5766_v30  ;;  %2497 = vmatmul.mubr.msk.f32.gmra.mrb[22].mxu1 %vm358_vm7, %v5573_v31 }
 0x206   :  { %3330 = vmatpush3.bf16.msra.mxu0 %v5767_v61 }
 0x209   :  { %2491 = vmatmul.mubr.msk.f32.vlgmr.msra.gmra.mrb[20].mxu0 %vm354_vm5, %v5573_v31 }
 0x20a   :  { %2492 = vmatprep.mubr.msk.f32.mxu0 %vm359_vm6, %v5573_v31 }
 0x20d   :  { %2493 = vmatmul.mubr.msk.f32.gmra.mrb[22].mxu0 %vm358_vm7, %v5573_v31 }
 0x232   :  { %v2593_v53 = vpop.f32.mrb[0].mxu1 }
 0x233   :  { %v2594_v60 = vpop.f32.mrb[1].mxu1 }
 0x234   :  { %v2595_v9 = vadd.f32 %v2594_v60, %v2593_v53 }
 0x236   :  { %v2596_v11 = vpop.f32.mrb[2].mxu1 }
 0x237   :  { %v2597_v52 = vpop.f32.mrb[3].mxu1 }
 0x238   :  { %v2598_v44 = vadd.f32 %v2597_v52, %v2596_v11 }
 0x23b   :  { %v2555_v21 = vpop.f32.mrb[0].mxu0 }
 0x23c   :  { %v2556_v33 = vpop.f32.mrb[1].mxu0 }
 0x23d   :  { %v2557_v32 = vadd.f32 %v2556_v33, %v2555_v21 }
 0x23f   :  { %v796_v36 = vadd.f32 %v2595_v9, %v2557_v32  ;;  %v2558_v19 = vpop.f32.mrb[2].mxu0 }
 0x240   :  { %v2559_v6 = vpop.f32.mrb[3].mxu0 }
 0x241   :  { %v2560_v7 = vadd.f32 %v2559_v6, %v2558_v19 }
 0x243   :  { %v803_v48 = vadd.f32 %v2598_v44, %v2560_v7 }
 0x252   :  { %v2669_v43 = vpop.f32.mrb[4].mxu1 }
 0x253   :  { %v2670_v49 = vpop.f32.mrb[5].mxu1 }
 0x254   :  { %v2671_v57 = vadd.f32 %v2670_v49, %v2669_v43 }
 0x256   :  { %v2672_v27 = vpop.f32.mrb[6].mxu1 }
 0x257   :  { %v2673_v46 = vpop.f32.mrb[7].mxu1 }
 0x258   :  { %v2674_v31 = vadd.f32 %v2673_v46, %v2672_v27 }
 0x25c   :  { %v2631_v15 = vpop.f32.mrb[4].mxu0 }
 0x25d   :  { %v2632_v4 = vpop.f32.mrb[5].mxu0 }
 0x25e   :  { %v2633_v5 = vadd.f32 %v2632_v4, %v2631_v15 }
 0x260   :  { %v941_v14 = vadd.f32 %v2633_v5, %v796_v36  ;;  %v2634_v26 = vpop.f32.mrb[6].mxu0 }
 0x261   :  { %v2635_v62 = vpop.f32.mrb[7].mxu0 }
 0x262   :  { %v2636_v56 = vadd.f32 %v2635_v62, %v2634_v26  ;;  %v1058_v35 = vadd.f32 %v2671_v57, %v941_v14 }
 0x264   :  { %v950_v24 = vadd.f32 %v2636_v56, %v803_v48 }
 0x266   :  { %v1069_v41 = vadd.f32 %v2674_v31, %v950_v24 }
 0x272   :  { %v2745_v39 = vpop.f32.mrb[8].mxu1 }
 0x273   :  { %v2746_v0 = vpop.f32.mrb[9].mxu1 }
 0x274   :  { %v2747_v28 = vadd.f32 %v2746_v0, %v2745_v39 }
 0x276   :  { %v2748_v38 = vpop.f32.mrb[10].mxu1 }
 0x277   :  { %v2749_v47 = vpop.f32.mrb[11].mxu1 }
 0x278   :  { %v2750_v55 = vadd.f32 %v2749_v47, %v2748_v38 }
 0x27c   :  { %v2707_v16 = vpop.f32.mrb[8].mxu0 }
 0x27d   :  { %v2708_v37 = vpop.f32.mrb[9].mxu0 }
 0x27e   :  { %v2709_v29 = vadd.f32 %v2708_v37, %v2707_v16 }
 0x280   :  { %v1237_v54 = vadd.f32 %v2709_v29, %v1058_v35  ;;  %v2710_v17 = vpop.f32.mrb[10].mxu0 }
 0x281   :  { %v2711_v58 = vpop.f32.mrb[11].mxu0 }
 0x282   :  { %v2712_v18 = vadd.f32 %v2711_v58, %v2710_v17  ;;  %v1348_v1 = vadd.f32 %v2747_v28, %v1237_v54 }
 0x284   :  { %v1244_v25 = vadd.f32 %v2712_v18, %v1069_v41 }
 0x286   :  { %v1355_v3 = vadd.f32 %v2750_v55, %v1244_v25 }
 0x292   :  { %v2821_v12 = vpop.f32.mrb[12].mxu1 }
 0x293   :  { %v2822_v13 = vpop.f32.mrb[13].mxu1 }
 0x294   :  { %v2823_v34 = vadd.f32 %v2822_v13, %v2821_v12 }
 0x296   :  { %v2824_v23 = vpop.f32.mrb[14].mxu1 }
 0x297   :  { %v2825_v2 = vpop.f32.mrb[15].mxu1 }
 0x298   :  { %v2826_v42 = vadd.f32 %v2825_v2, %v2824_v23 }
 0x29c   :  { %v2783_v8 = vpop.f32.mrb[12].mxu0 }
 0x29d   :  { %v2784_v51 = vpop.f32.mrb[13].mxu0 }
 0x29e   :  { %v2785_v22 = vadd.f32 %v2784_v51, %v2783_v8 }
 0x2a0   :  { %v1467_v40 = vadd.f32 %v2785_v22, %v1348_v1  ;;  %v2786_v59 = vpop.f32.mrb[14].mxu0 }
 0x2a1   :  { %v2787_v50 = vpop.f32.mrb[15].mxu0 }
 0x2a2   :  { %v2788_v63 = vadd.f32 %v2787_v50, %v2786_v59  ;;  %v1714_v10 = vadd.f32 %v2823_v34, %v1467_v40 }
 0x2a4   :  { %v1482_v20 = vadd.f32 %v2788_v63, %v1355_v3 }
 0x2a6   :  { %v1721_v45 = vadd.f32 %v2826_v42, %v1482_v20 }
 0x2b2   :  { %v2897_v30 = vpop.f32.mrb[16].mxu1 }
 0x2b3   :  { %v2898_v61 = vpop.f32.mrb[17].mxu1 }
 0x2b4   :  { %v2899_v53 = vadd.f32 %v2898_v61, %v2897_v30 }
 0x2b6   :  { %v2900_v60 = vpop.f32.mrb[18].mxu1 }
 0x2b7   :  { %v2901_v9 = vpop.f32.mrb[19].mxu1 }
 0x2b8   :  { %v2902_v11 = vadd.f32 %v2901_v9, %v2900_v60 }
 0x2bc   :  { %v2859_v52 = vpop.f32.mrb[16].mxu0 }
 0x2bd   :  { %v2860_v44 = vpop.f32.mrb[17].mxu0 }
 0x2be   :  { %v2861_v21 = vadd.f32 %v2860_v44, %v2859_v52 }
 0x2c0   :  { %v1859_v33 = vadd.f32 %v2861_v21, %v1714_v10  ;;  %v2862_v32 = vpop.f32.mrb[18].mxu0 }
 0x2c1   :  { %v2863_v36 = vpop.f32.mrb[19].mxu0 }
 0x2c2   :  { %v2864_v19 = vadd.f32 %v2863_v36, %v2862_v32  ;;  %v1976_v6 = vadd.f32 %v2899_v53, %v1859_v33 }
 0x2c4   :  { %v1868_v7 = vadd.f32 %v2864_v19, %v1721_v45 }
 0x2c6   :  { %v1987_v48 = vadd.f32 %v2902_v11, %v1868_v7 }
 0x2d2   :  { %v2973_v43 = vpop.f32.mrb[20].mxu1 }
 0x2d3   :  { %v2974_v49 = vpop.f32.mrb[21].mxu1 }
 0x2d4   :  { %v2975_v57 = vadd.f32 %v2974_v49, %v2973_v43 }
 0x2d6   :  { %v2976_v27 = vpop.f32.mrb[22].mxu1 }
 0x2d7   :  { %v2977_v46 = vpop.f32.mrb[23].mxu1 }
 0x2d8   :  { %v2978_v31 = vadd.f32 %v2977_v46, %v2976_v27 }
 0x2dc   :  { %v2935_v15 = vpop.f32.mrb[20].mxu0 }
 0x2dd   :  { %v2936_v4 = vpop.f32.mrb[21].mxu0 }
 0x2de   :  { %v2937_v5 = vadd.f32 %v2936_v4, %v2935_v15 }
 0x2e0   :  { %v2155_v14 = vadd.f32 %v2937_v5, %v1976_v6  ;;  %v2938_v26 = vpop.f32.mrb[22].mxu0 }
 0x2e1   :  { %v2939_v62 = vpop.f32.mrb[23].mxu0 }
 0x2e2   :  { %v2266_v56 = vadd.f32 %v2975_v57, %v2155_v14  ;;  %v2940_v35 = vadd.f32 %v2939_v62, %v2938_v26 }
 0x2e4   :  { %v2162_v24 = vadd.f32 %v2940_v35, %v1987_v48 }
 0x2e6   :  { %v2273_v41 = vadd.f32 %v2978_v31, %v2162_v24 }
 0x2e7   :  { %3636 = dma.done.wait [#allocation3], 256 }
 0x2e8   :  { %3637 = vsyncadd [#allocation3], 4294967040  ;;  %s3652_s1 = smov [#allocation9]   ;;  %v2282_v39 = vld [vmem:[#allocation2] sm:$0xff]  ;;  %v2283_v0 = vld [vmem:[#allocation2 + $0x8] sm:$0xff] }
 0x2e9   :  { %s2293_s6 = sshll.u32 %s3652_s1, 4  ;;  %v2284_v28 = vadd.f32 %v2282_v39, %v2266_v56  ;;  %v2285_v38 = vadd.f32 %v2283_v0, %v2273_v41  ;;  %s2294_s6 = int_to_ptr.vmem [resolvable:$true] %s2293_s6 }
 0x2ea   :  { %s3606_s9 = scalar_lea.vmem %s2294_s6, 256  ;;  %p3611_p13 = scmp.lt.s32.totalorder %s2294_s6, %s2294_s6 }
 0x2eb   :  { %2286 = vst [vmem:[#allocation9] sm:$0xff] %v2284_v28  ;;  %2287 = vst [vmem:[#allocation9 + $0x8] sm:$0xff] %v2285_v38  ;;  %p3607_p12 = scmp.ne.s32.totalorder %s2294_s6, %s3606_s9  ;;  %p3612_p0 = scmp.lt.s32.totalorder %s3606_s9, %s3606_s9 }
 0x2ed   :  { %p3613_p1 = por %p3612_p0, %p3611_p13 }
 0x2ef   :  { %p3614_p2 = pnand %p3613_p1, %p3607_p12 }
 0x2f1   :  { %3617 = shalt.err (!%p3614_p2)
}
 0x2f2   :  { %s3618_s15 = scalar_lea.hbm %s5386_s4, 256 }
 0x2f3   :  { %p3619_p3 = scmp.ne.s32.totalorder %s5386_s4, %s3618_s15  ;;  %p3622_p4 = scmp.lt.u32.totalorder %s3618_s15, %s5386_s4 }
 0x2f5   :  { %p3624_p5 = pnand %p3622_p4, %p3619_p3 }
 0x2f7   :  { %3627 = shalt.err (!%p3624_p5)
}
 0x2f8   :  { %2299 = dma.vmem_to_hbm [thread:$0]  %s2294_s6, 256, %s5386_s4, [#allocation8], %s3646_s29, %s3646_s29, %s3647_s30  }
 0x2f9   :  { %3638 = dma.done.wait [#allocation8], 256  }
 0x2fa   :  { %3639 = vsyncadd [#allocation8], 4294967040 }
 0x2fb   :  { %2303 = vsyncpa [#allocation7], 1 }
 0x2fc   :  { %2304 = vsyncpa [#allocation8], 1 }
 0x2fd   :  { %2305 = vsyncmov [#allocation3] }
 0x300   :  { %s2306_s0 = vpop.sfrf %2305 }
 0x301   :  { %p2498_p6 = scmp.ne.s32.totalorder %s2306_s0, 0 }
 0x303   :  { %2310 = shalt.err (%p2498_p6)  }
 0x304   :  { %2312 = vsyncmov [#allocation3 + $0x1] }
 0x307   :  { %s2313_s3 = vpop.sfrf %2312 }
 0x308   :  { %p2499_p7 = scmp.ne.s32.totalorder %s2313_s3, 0 }
 0x30a   :  { %2317 = shalt.err (%p2499_p7)  }

</bundles_post_ra>
